<compile_context>
chip_gen: v6e
topology: v6e:2x2x1
jax: 0.10.0
libtpu: 0.0.40
codegen_flags: <defaults>
</compile_context>

<pallas_src>
import jax
import jax.numpy as jnp
from jax.experimental import pallas as pl
from jax.experimental.pallas import tpu as pltpu


def _round_up(x, m):
    return ((int(x) + m - 1) // m) * m


def _vmem_capacity_bytes():
    try:
        return int(pltpu.get_tpu_info().vmem_capacity_bytes)
    except Exception:
        return 64 * 1024 * 1024  # conservative (v7x per-core VMEM)


def _num_tensorcores():
    # Megacore detection; falls back to 1 (v5e/v6e), which is the safe choice.
    try:
        info = pltpu.get_tpu_info()
        for attr in ("num_cores", "core_count", "num_tensorcores", "tensorcore_count"):
            v = getattr(info, attr, None)
            if v:
                return int(v)
    except Exception:
        pass
    return 1


def _mpu_kernel(u_ref, p_ref, wu_ref, wp_ref, b_ref, out_ref):
    # u_ref: (tile|1, fea)   p_ref: (tile|1, fea)
    # wu_ref/wp_ref: (fea, filter)   b_ref: (1, filter) f32   out_ref: (tile, fea)
    w_dtype = wu_ref.dtype
    u = jnp.maximum(u_ref[...], 0).astype(w_dtype)      # relu(unary) -> MXU dtype
    p_raw = p_ref[...]                                    # original pair (used in output)
    p = jnp.maximum(p_raw, 0).astype(w_dtype)             # relu(pair)

    # Linear over the concatenated feature == sum of two matmuls (f32 accumulation).
    logits = (
        jnp.dot(u, wu_ref[...], preferred_element_type=jnp.float32)
        + jnp.dot(p, wp_ref[...], preferred_element_type=jnp.float32)
        + b_ref[...]
    )
    # mean(sigmoid(x)) == 0.5 + 0.5 * mean(tanh(x/2)): one EUP op per element.
    t = jnp.tanh(0.5 * logits)
    gate_mean = 0.5 + 0.5 * jnp.mean(t, axis=1, keepdims=True)   # (rows, 1) f32

    # Output multiplies the ORIGINAL (un-relu'd) pair term, as in PyTorch.
    out_ref[...] = (p_raw * gate_mean).astype(out_ref.dtype)


def prepare_params(weight, bias, fea_size, *, mxu_bf16=True):
    """Once-per-module weight prep: split over the concat axis, transpose, cast."""
    w_dtype = jnp.bfloat16 if mxu_bf16 else jnp.float32
    w_u = jnp.transpose(weight[:, :fea_size]).astype(w_dtype)   # (fea, filter)
    w_p = jnp.transpose(weight[:, fea_size:]).astype(w_dtype)   # (fea, filter)
    b2d = bias.reshape(1, -1).astype(jnp.float32)               # (1, filter)
    return w_u, w_p, b2d


def message_passing_unit_v1(unary_term, pair_term, weight=None, bias=None, *,
                            params=None, tile_n=None, out_dtype=None, mxu_bf16=True):
    """unary_term/pair_term: [Nu, fea]/[Np, fea]. weight: [filter, 2*fea]. bias: [filter]."""
    Nu, fea = unary_term.shape
    Np, fea_p = pair_term.shape
    assert fea == fea_p, "unary/pair feature sizes must match"
    assert Nu == Np or Nu == 1 or Np == 1, "incompatible row counts"

    if params is None:
        assert weight is not None and bias is not None
        assert weight.shape[1] == 2 * fea
        params = prepare_params(weight, bias, fea, mxu_bf16=mxu_bf16)
    w_u, w_p, b2d = params
    filter_size = w_u.shape[1]

    N = max(Nu, Np)
    # Broadcast branches of the PyTorch module: keep the 1-row tensor as-is and
    # broadcast inside VMEM (no N x fea materialization in HBM).
    u_bcast = (Nu == 1 and N > 1)
    p_bcast = (Np == 1 and N > 1)

    if out_dtype is None:
        out_dtype = pair_term.dtype

    cap = _vmem_capacity_bytes()
    ncores = _num_tensorcores()
    budget = int(0.45 * cap)
    w_itemsize = jnp.dtype(w_u.dtype).itemsize

    def est_vmem(tn):
        b = 2 * tn * fea * jnp.dtype(out_dtype).itemsize                       # output double-buffer
        b += (fea if u_bcast else 2 * tn * fea) * jnp.dtype(unary_term.dtype).itemsize
        b += (fea if p_bcast else 2 * tn * fea) * jnp.dtype(pair_term.dtype).itemsize
        b += 2 * fea * filter_size * w_itemsize                                 # W_u^T + W_p^T (single-buffered)
        b += filter_size * 4                                                    # bias
        return b

    # ---- generation-aware tile selection ------------------------------------
    if tile_n is None:
        req = 1024 if fea <= 512 else 512     # big tiles amortize per-step overhead
    else:
        req = max(8, (int(tile_n) // 8) * 8)

    if N <= 256 or (ncores == 1 and N <= req and est_vmem(N) <= budget):
        tn = N   # single block; block shape equals full array dims (always legal)
    else:
        target_steps = max(2, 2 * ncores)     # >= 2 pipeline steps per TensorCore
        tn = _round_up(pl.cdiv(N, target_steps), 8)
        tn = max(256, tn)                     # keep DMAs large / amortize step overhead
        tn = min(req, tn)
        tn = max(8, (tn // 8) * 8)
        while tn > 64 and est_vmem(tn) > budget:
            tn = max(64, ((tn // 2) // 8) * 8)

    grid = (pl.cdiv(N, tn),)                  # ragged last block handled by Pallas masking

    est = est_vmem(tn)
    vmem_limit = int(min(int(0.9 * cap), max(4 * est + (16 << 20), 32 << 20)))

    def build_call(single_buffer_consts):
        const_kwargs = {}
        if single_buffer_consts and hasattr(pl, "Buffered"):
            const_kwargs = {"pipeline_mode": pl.Buffered(1)}   # resident, fetched once

        u_spec = (pl.BlockSpec((1, fea), lambda i: (0, 0), **const_kwargs) if u_bcast
                  else pl.BlockSpec((tn, fea), lambda i: (i, 0)))
        p_spec = (pl.BlockSpec((1, fea), lambda i: (0, 0), **const_kwargs) if p_bcast
                  else pl.BlockSpec((tn, fea), lambda i: (i, 0)))
        wu_spec = pl.BlockSpec((fea, filter_size), lambda i: (0, 0), **const_kwargs)
        wp_spec = pl.BlockSpec((fea, filter_size), lambda i: (0, 0), **const_kwargs)
        b_spec = pl.BlockSpec((1, filter_size), lambda i: (0, 0), **const_kwargs)

        return pl.pallas_call(
            _mpu_kernel,
            out_shape=jax.ShapeDtypeStruct((N, fea), out_dtype),
            grid_spec=pltpu.PrefetchScalarGridSpec(
                num_scalar_prefetch=0,
                grid=grid,
                in_specs=[u_spec, p_spec, wu_spec, wp_spec, b_spec],
                out_specs=pl.BlockSpec((tn, fea), lambda i: (i, 0)),
            ),
            compiler_params=pltpu.CompilerParams(
                dimension_semantics=("parallel",),
                vmem_limit_bytes=vmem_limit,   # always set (v5e default is only 16 MiB)
            ),
        )

    try:
        out = build_call(True)(unary_term, pair_term, w_u, w_p, b2d)
    except Exception:
        # Fallback if this jax version rejects pipeline_mode=pl.Buffered(1) on
        # constant-index blocks (only costs a little extra resident VMEM).
        out = build_call(False)(unary_term, pair_term, w_u, w_p, b2d)
    return out


def _reference(unary_term, pair_term, weight, bias):
    if unary_term.shape[0] == 1 and pair_term.shape[0] > 1:
        unary_term = jnp.broadcast_to(unary_term, (pair_term.shape[0], unary_term.shape[1]))
    if unary_term.shape[0] > 1 and pair_term.shape[0] == 1:
        pair_term = jnp.broadcast_to(pair_term, (unary_term.shape[0], pair_term.shape[1]))
    gate = jnp.concatenate([unary_term, pair_term], axis=1)
    gate = jnp.maximum(gate, 0.0)
    gate = jax.nn.sigmoid(gate @ weight.T + bias).mean(axis=1)
    return pair_term * gate[:, None]


if __name__ == "__main__":
    # Shapes consistent with the module: fea_size=128 (lane-dense), filter_size=128.
    fea_size, filter_size = 128, 128
    N = 600  # deliberately not a multiple of the tile -> exercises masked partial last block

    key = jax.random.PRNGKey(0)
    k1, k2, k3, k4, k5 = jax.random.split(key, 5)
    unary = jax.random.normal(k1, (N, fea_size), dtype=jnp.float32)
    pair = jax.random.normal(k2, (N, fea_size), dtype=jnp.float32)
    weight = jax.random.normal(k3, (filter_size, 2 * fea_size), dtype=jnp.float32) * 0.05
    bias = jax.random.normal(k4, (filter_size,), dtype=jnp.float32) * 0.05

    # Hoisted once-per-module weight prep (avoids per-call slice/transpose/cast XLA ops).
    params = prepare_params(weight, bias, fea_size)

    tol = dict(atol=2e-2, rtol=2e-2)  # bf16 MXU inputs, f32 accumulation
    ref = _reference(unary, pair, weight, bias)

    # Case 1: explicit small tile -> multi-step grid with a ragged (masked) last block.
    out = jax.block_until_ready(
        message_passing_unit_v1(unary, pair, params=params, tile_n=256))
    assert out.shape == ref.shape
    assert jnp.allclose(out, ref, **tol), "mismatch vs reference (tiled / ragged case)"

    # Case 2: auto tile selection (single block or generation-aware tiling).
    out2 = jax.block_until_ready(
        message_passing_unit_v1(unary, pair, params=params))
    assert jnp.allclose(out2, ref, **tol), "mismatch vs reference (auto-tile case)"

    # Case 3: broadcast unary (1 row) -- stays a resident (1, fea) block, no HBM broadcast.
    unary1 = jax.random.normal(k5, (1, fea_size), dtype=jnp.float32)
    out_b = jax.block_until_ready(
        message_passing_unit_v1(unary1, pair, params=params, tile_n=256))
    ref_b = _reference(unary1, pair, weight, bias)
    assert jnp.allclose(out_b, ref_b, **tol), "mismatch vs reference (unary broadcast)"

    # Case 4: broadcast pair (1 row).
    pair1 = jax.random.normal(k2, (1, fea_size), dtype=jnp.float32)
    out_c = jax.block_until_ready(
        message_passing_unit_v1(unary, pair1, params=params, tile_n=256))
    ref_c = _reference(unary, pair1, weight, bias)
    assert jnp.allclose(out_c, ref_c, **tol), "mismatch vs reference (pair broadcast)"

    print("KERNEL_OK")
</pallas_src>

<mosaic_0001>
module attributes {stable_mosaic.version = 11 : i64} {
  func.func @_mpu_kernel(%arg0: i32, %arg1: memref<256x128xf32, #tpu.memory_space<vmem>>, %arg2: memref<256x128xf32, #tpu.memory_space<vmem>>, %arg3: memref<128x128xbf16, #tpu.memory_space<vmem>>, %arg4: memref<128x128xbf16, #tpu.memory_space<vmem>>, %arg5: memref<1x128xf32, #tpu.memory_space<vmem>>, %arg6: memref<256x128xf32, #tpu.memory_space<vmem>>) attributes {dimension_semantics = [#tpu.dimension_semantics<parallel>], iteration_bounds = array<i64: 3>, scalar_prefetch = 0 : i64, scratch_operands = 0 : i64, tpu.core_type = #tpu.core_type<tc>, window_params = [{transform_indices = @transform_0, window_bounds = array<i64: 256, 128>}, {transform_indices = @transform_1, window_bounds = array<i64: 256, 128>}, {pipeline_mode = #tpu.pipeline_mode<synchronous>, transform_indices = @transform_2, window_bounds = array<i64: 128, 128>}, {pipeline_mode = #tpu.pipeline_mode<synchronous>, transform_indices = @transform_3, window_bounds = array<i64: 128, 128>}, {pipeline_mode = #tpu.pipeline_mode<synchronous>, transform_indices = @transform_4, window_bounds = array<i64: 1, 128>}, {transform_indices = @transform_5, window_bounds = array<i64: 256, 128>}]} {
    %c0 = arith.constant 0 : index
    %c0_0 = arith.constant 0 : index
    %0 = vector.load %arg1[%c0, %c0_0] : memref<256x128xf32, #tpu.memory_space<vmem>>, vector<256x128xf32>
    %cst = arith.constant 0.000000e+00 : f32
    %1 = vector.broadcast %cst : f32 to vector<256x128xf32>
    %2 = arith.maximumf %0, %1 : vector<256x128xf32>
    %3 = arith.truncf %2 : vector<256x128xf32> to vector<256x128xbf16>
    %c0_1 = arith.constant 0 : index
    %c0_2 = arith.constant 0 : index
    %4 = vector.load %arg2[%c0_1, %c0_2] : memref<256x128xf32, #tpu.memory_space<vmem>>, vector<256x128xf32>
    %cst_3 = arith.constant 0.000000e+00 : f32
    %5 = vector.broadcast %cst_3 : f32 to vector<256x128xf32>
    %6 = arith.maximumf %4, %5 : vector<256x128xf32>
    %7 = arith.truncf %6 : vector<256x128xf32> to vector<256x128xbf16>
    %c0_4 = arith.constant 0 : index
    %c0_5 = arith.constant 0 : index
    %8 = vector.load %arg3[%c0_4, %c0_5] : memref<128x128xbf16, #tpu.memory_space<vmem>>, vector<128x128xbf16>
    %cst_6 = arith.constant dense<0.000000e+00> : vector<256x128xf32>
    %9 = tpu.matmul %3, %8, %cst_6 {dimension_numbers = #tpu.dot_dimension_numbers<[1], [0], [0], [1], [0, 0, 1, 1], [], []>} : vector<256x128xbf16>, vector<128x128xbf16>, vector<256x128xf32> -> vector<256x128xf32>
    %c0_7 = arith.constant 0 : index
    %c0_8 = arith.constant 0 : index
    %10 = vector.load %arg4[%c0_7, %c0_8] : memref<128x128xbf16, #tpu.memory_space<vmem>>, vector<128x128xbf16>
    %cst_9 = arith.constant dense<0.000000e+00> : vector<256x128xf32>
    %11 = tpu.matmul %7, %10, %cst_9 {dimension_numbers = #tpu.dot_dimension_numbers<[1], [0], [0], [1], [0, 0, 1, 1], [], []>} : vector<256x128xbf16>, vector<128x128xbf16>, vector<256x128xf32> -> vector<256x128xf32>
    %12 = arith.addf %9, %11 : vector<256x128xf32>
    %c0_10 = arith.constant 0 : index
    %c0_11 = arith.constant 0 : index
    %13 = vector.load %arg5[%c0_10, %c0_11] : memref<1x128xf32, #tpu.memory_space<vmem>>, vector<1x128xf32>
    %14 = vector.broadcast %13 : vector<1x128xf32> to vector<256x128xf32>
    %15 = arith.addf %12, %14 : vector<256x128xf32>
    %cst_12 = arith.constant 5.000000e-01 : f32
    %16 = vector.broadcast %cst_12 : f32 to vector<256x128xf32>
    %17 = arith.mulf %16, %15 : vector<256x128xf32>
    %18 = math.tanh %17 : vector<256x128xf32>
    %cst_13 = arith.constant dense<0.000000e+00> : vector<256xf32>
    %19 = vector.multi_reduction <add>, %18, %cst_13 [1] : vector<256x128xf32> to vector<256xf32>
    %20 = vector.shape_cast %19 : vector<256xf32> to vector<256x1xf32>
    %cst_14 = arith.constant 1.280000e+02 : f32
    %21 = vector.broadcast %cst_14 : f32 to vector<256x1xf32>
    %22 = arith.divf %20, %21 : vector<256x1xf32>
    %cst_15 = arith.constant 5.000000e-01 : f32
    %23 = vector.broadcast %cst_15 : f32 to vector<256x1xf32>
    %24 = arith.mulf %23, %22 : vector<256x1xf32>
    %cst_16 = arith.constant 5.000000e-01 : f32
    %25 = vector.broadcast %cst_16 : f32 to vector<256x1xf32>
    %26 = arith.addf %25, %24 : vector<256x1xf32>
    %27 = vector.broadcast %26 : vector<256x1xf32> to vector<256x128xf32>
    %28 = arith.mulf %4, %27 : vector<256x128xf32>
    %c0_17 = arith.constant 0 : index
    %c0_18 = arith.constant 0 : index
    %29 = vector.load %arg6[%c0_17, %c0_18] : memref<256x128xf32, #tpu.memory_space<vmem>>, vector<256x128xf32>
    tpu.vector_store %arg6[%c0_17, %c0_18], %28 {strides = array<i32>} : memref<256x128xf32, #tpu.memory_space<vmem>>, vector<256x128xf32>,
    return
  }
  func.func @transform_0(%arg0: i32) -> (i32, i32) {
    %c0_i32 = arith.constant 0 : i32
    %c0_i32_0 = arith.constant 0 : i32
    return %arg0, %c0_i32 : i32, i32
  }
  func.func @transform_1(%arg0: i32) -> (i32, i32) {
    %c0_i32 = arith.constant 0 : i32
    %c0_i32_0 = arith.constant 0 : i32
    return %arg0, %c0_i32 : i32, i32
  }
  func.func @transform_2(%arg0: i32) -> (i32, i32) {
    %c0_i32 = arith.constant 0 : i32
    %c0_i32_0 = arith.constant 0 : i32
    %c0_i32_1 = arith.constant 0 : i32
    return %c0_i32, %c0_i32_0 : i32, i32
  }
  func.func @transform_3(%arg0: i32) -> (i32, i32) {
    %c0_i32 = arith.constant 0 : i32
    %c0_i32_0 = arith.constant 0 : i32
    %c0_i32_1 = arith.constant 0 : i32
    return %c0_i32, %c0_i32_0 : i32, i32
  }
  func.func @transform_4(%arg0: i32) -> (i32, i32) {
    %c0_i32 = arith.constant 0 : i32
    %c0_i32_0 = arith.constant 0 : i32
    %c0_i32_1 = arith.constant 0 : i32
    return %c0_i32, %c0_i32_0 : i32, i32
  }
  func.func @transform_5(%arg0: i32) -> (i32, i32) {
    %c0_i32 = arith.constant 0 : i32
    %c0_i32_0 = arith.constant 0 : i32
    return %arg0, %c0_i32 : i32, i32
  }
}

module attributes {stable_mosaic.version = 11 : i64} {
  func.func @_mpu_kernel(%arg0: i32, %arg1: memref<256x128xf32, #tpu.memory_space<vmem>>, %arg2: memref<256x128xf32, #tpu.memory_space<vmem>>, %arg3: memref<128x128xbf16, #tpu.memory_space<vmem>>, %arg4: memref<128x128xbf16, #tpu.memory_space<vmem>>, %arg5: memref<1x128xf32, #tpu.memory_space<vmem>>, %arg6: memref<256x128xf32, #tpu.memory_space<vmem>>) attributes {dimension_semantics = [#tpu.dimension_semantics<parallel>], iteration_bounds = array<i64: 3>, scalar_prefetch = 0 : i64, scratch_operands = 0 : i64, tpu.core_type = #tpu.core_type<tc>, window_params = [{transform_indices = @transform_0, window_bounds = array<i64: 256, 128>}, {transform_indices = @transform_1, window_bounds = array<i64: 256, 128>}, {pipeline_mode = #tpu.pipeline_mode<synchronous>, transform_indices = @transform_2, window_bounds = array<i64: 128, 128>}, {pipeline_mode = #tpu.pipeline_mode<synchronous>, transform_indices = @transform_3, window_bounds = array<i64: 128, 128>}, {pipeline_mode = #tpu.pipeline_mode<synchronous>, transform_indices = @transform_4, window_bounds = array<i64: 1, 128>}, {transform_indices = @transform_5, window_bounds = array<i64: 256, 128>}]} {
    %c0 = arith.constant 0 : index
    %c0_0 = arith.constant 0 : index
    %0 = vector.load %arg1[%c0, %c0_0] : memref<256x128xf32, #tpu.memory_space<vmem>>, vector<256x128xf32>
    %cst = arith.constant 0.000000e+00 : f32
    %1 = vector.broadcast %cst : f32 to vector<256x128xf32>
    %2 = arith.maximumf %0, %1 : vector<256x128xf32>
    %3 = arith.truncf %2 : vector<256x128xf32> to vector<256x128xbf16>
    %c0_1 = arith.constant 0 : index
    %c0_2 = arith.constant 0 : index
    %4 = vector.load %arg2[%c0_1, %c0_2] : memref<256x128xf32, #tpu.memory_space<vmem>>, vector<256x128xf32>
    %cst_3 = arith.constant 0.000000e+00 : f32
    %5 = vector.broadcast %cst_3 : f32 to vector<256x128xf32>
    %6 = arith.maximumf %4, %5 : vector<256x128xf32>
    %7 = arith.truncf %6 : vector<256x128xf32> to vector<256x128xbf16>
    %c0_4 = arith.constant 0 : index
    %c0_5 = arith.constant 0 : index
    %8 = vector.load %arg3[%c0_4, %c0_5] : memref<128x128xbf16, #tpu.memory_space<vmem>>, vector<128x128xbf16>
    %cst_6 = arith.constant dense<0.000000e+00> : vector<256x128xf32>
    %9 = tpu.matmul %3, %8, %cst_6 {dimension_numbers = #tpu.dot_dimension_numbers<[1], [0], [0], [1], [0, 0, 1, 1], [], []>} : vector<256x128xbf16>, vector<128x128xbf16>, vector<256x128xf32> -> vector<256x128xf32>
    %c0_7 = arith.constant 0 : index
    %c0_8 = arith.constant 0 : index
    %10 = vector.load %arg4[%c0_7, %c0_8] : memref<128x128xbf16, #tpu.memory_space<vmem>>, vector<128x128xbf16>
    %cst_9 = arith.constant dense<0.000000e+00> : vector<256x128xf32>
    %11 = tpu.matmul %7, %10, %cst_9 {dimension_numbers = #tpu.dot_dimension_numbers<[1], [0], [0], [1], [0, 0, 1, 1], [], []>} : vector<256x128xbf16>, vector<128x128xbf16>, vector<256x128xf32> -> vector<256x128xf32>
    %12 = arith.addf %9, %11 : vector<256x128xf32>
    %c0_10 = arith.constant 0 : index
    %c0_11 = arith.constant 0 : index
    %13 = vector.load %arg5[%c0_10, %c0_11] : memref<1x128xf32, #tpu.memory_space<vmem>>, vector<1x128xf32>
    %14 = vector.broadcast %13 : vector<1x128xf32> to vector<256x128xf32>
    %15 = arith.addf %12, %14 : vector<256x128xf32>
    %cst_12 = arith.constant 5.000000e-01 : f32
    %16 = vector.broadcast %cst_12 : f32 to vector<256x128xf32>
    %17 = arith.mulf %16, %15 : vector<256x128xf32>
    %18 = math.tanh %17 : vector<256x128xf32>
    %cst_13 = arith.constant dense<0.000000e+00> : vector<256xf32>
    %19 = vector.multi_reduction <add>, %18, %cst_13 [1] : vector<256x128xf32> to vector<256xf32>
    %20 = vector.shape_cast %19 : vector<256xf32> to vector<256x1xf32>
    %cst_14 = arith.constant 1.280000e+02 : f32
    %21 = vector.broadcast %cst_14 : f32 to vector<256x1xf32>
    %22 = arith.divf %20, %21 : vector<256x1xf32>
    %cst_15 = arith.constant 5.000000e-01 : f32
    %23 = vector.broadcast %cst_15 : f32 to vector<256x1xf32>
    %24 = arith.mulf %23, %22 : vector<256x1xf32>
    %cst_16 = arith.constant 5.000000e-01 : f32
    %25 = vector.broadcast %cst_16 : f32 to vector<256x1xf32>
    %26 = arith.addf %25, %24 : vector<256x1xf32>
    %27 = vector.broadcast %26 : vector<256x1xf32> to vector<256x128xf32>
    %28 = arith.mulf %4, %27 : vector<256x128xf32>
    %c0_17 = arith.constant 0 : index
    %c0_18 = arith.constant 0 : index
    %29 = vector.load %arg6[%c0_17, %c0_18] : memref<256x128xf32, #tpu.memory_space<vmem>>, vector<256x128xf32>
    tpu.vector_store %arg6[%c0_17, %c0_18], %28 {strides = array<i32>} : memref<256x128xf32, #tpu.memory_space<vmem>>, vector<256x128xf32>,
    return
  }
  func.func @transform_0(%arg0: i32) -> (i32, i32) {
    %c0_i32 = arith.constant 0 : i32
    %c0_i32_0 = arith.constant 0 : i32
    return %arg0, %c0_i32 : i32, i32
  }
  func.func @transform_1(%arg0: i32) -> (i32, i32) {
    %c0_i32 = arith.constant 0 : i32
    %c0_i32_0 = arith.constant 0 : i32
    return %arg0, %c0_i32 : i32, i32
  }
  func.func @transform_2(%arg0: i32) -> (i32, i32) {
    %c0_i32 = arith.constant 0 : i32
    %c0_i32_0 = arith.constant 0 : i32
    %c0_i32_1 = arith.constant 0 : i32
    return %c0_i32, %c0_i32_0 : i32, i32
  }
  func.func @transform_3(%arg0: i32) -> (i32, i32) {
    %c0_i32 = arith.constant 0 : i32
    %c0_i32_0 = arith.constant 0 : i32
    %c0_i32_1 = arith.constant 0 : i32
    return %c0_i32, %c0_i32_0 : i32, i32
  }
  func.func @transform_4(%arg0: i32) -> (i32, i32) {
    %c0_i32 = arith.constant 0 : i32
    %c0_i32_0 = arith.constant 0 : i32
    %c0_i32_1 = arith.constant 0 : i32
    return %c0_i32, %c0_i32_0 : i32, i32
  }
  func.func @transform_5(%arg0: i32) -> (i32, i32) {
    %c0_i32 = arith.constant 0 : i32
    %c0_i32_0 = arith.constant 0 : i32
    return %arg0, %c0_i32 : i32, i32
  }
}

</mosaic_0001>

<bundles_post_ra>
// kernel: tpu_custom_call.1
= control target key start
LH: loop header
LB: loop body
LE: loop exit
PB: predicated region body
PF: predicated region fallthrough
CT: control target
= control target key end

     0   :  { %s2520_s0 = inlined_call_operand.hbm [shape: f32[600,128], index: 0, kind: input, shape index: {}]   ;;  %s2521_s1 = inlined_call_operand.hbm [shape: f32[600,128], index: 1, kind: input, shape index: {}]   ;;  %s2522_s2 = inlined_call_operand.hbm [shape: bf16[128,128], index: 2, kind: input, shape index: {}]   ;;  %s2523_s3 = inlined_call_operand.hbm [shape: bf16[128,128], index: 3, kind: input, shape index: {}]   ;;  %s2524_s4 = inlined_call_operand.vmem [shape: f32[1,128], index: 4, kind: input, shape index: {}]   ;;  %s2525_s5 = inlined_call_operand.hbm [shape: f32[600,128], index: 5, kind: output, shape index: {}]  }
   0x1   :  { %2528 = sst [smem:[#allocation16_spill]] %s2522_s2 }
   0x2   :  { %10 = vsyncpa [#allocation3], 0 }
   0x3   :  { %12 = vsyncpa [#allocation3 + $0x1], 0 }
   0x4   :  { %13 = vsyncpa [#allocation6], 0 }
   0x5   :  { %15 = vsyncpa [#allocation6 + $0x1], 0 }
   0x6   :  { %16 = vsyncpa [#allocation9], 0 }
   0x7   :  { %17 = vsyncpa [#allocation4], 0 }
   0x8   :  { %19 = vsyncpa [#allocation4 + $0x1], 0  ;;  %s1985_s18 = smov 0   ;;  %s1987_s19 = smov 0  }
   0x9   :  { %s1989_s20 = smov 0   ;;  %s1991_s21 = smov 0  }
   0xa LB: > { %s2006_s22 = sadd.s32 4294967295, %s1940_s21   ;;  %s1413_s23 = sadd.s32 4294967294, %s1940_s21   ;;  %s1940_s21 = sphi %s1991_s21, %s2546_s21   ;;  %s1936_s20 = sphi %s1989_s20, %s2545_s20   ;;  %s1932_s19 = sphi %s1987_s19, %s2544_s19   ;;  %s1928_s18 = sphi %s1985_s18, %s2543_s18  }
   0xb   : > { %s2010_s24 = sadd.s32 1, %s1940_s21   ;;  %s32_s25 = sadd.s32 1, %s1936_s20 }
   0xc   : > { %s29_s26 = ssub.s32 %s1940_s21, %s2010_s24  ;;  %p39_p0 = scmp.ne.s32.totalorder %s1936_s20, %s1932_s19 }
   0xd   : > { %p30_p1 = scmp.eq.s32.totalorder %s29_s26, 0  ;;  %p40_p2 = scmp.eq.s32.totalorder %s1940_s21, 0 }
   0xe   : > { %p45_p3 = scmp.ne.s32.totalorder %s1932_s19, %s1928_s18  ;;  %p2526_p4 = scmp.eq.s32.totalorder %s2006_s22, 0 }
   0xf   : > { %s2022_s27 = scalar_select %p30_p1, %s1936_s20, %s32_s25  }
  0x10   : > { %p2024_p5 = por %p40_p2, %p39_p0  ;;  %p2030_p6 = por %p2526_p4, %p45_p3 }
  0x11   : > { %p158_p7 = scmp.eq.s32.totalorder %s2006_s22, 2  ;;  %p164_p8 = scmp.eq.s32.totalorder %s1413_s23, 2 }
  0x12   : > { %s2530_s29 = scalar_select %p2030_p6, 1, 0 }
  0x13   : > { %p1414_p9 = scmp.ge.s32.totalorder %s1940_s21, 1  ;;  %p171_p10 = scmp.lt.s32.totalorder %s1940_s21, 4 }
  0x14   : > { %p2037_p11 = por %p158_p7, %p39_p0  ;;  %p2041_p12 = por %p164_p8, %p45_p3 }
  0x15   : > { %p2045_p13 = pnand %p1414_p9, %p171_p10  ;;  %s1942_s8 = smov [#allocation7]  }
  0x16   : > { %s2531_s30 = scalar_select %p2037_p11, 1, 0 }
  0x17   : > { %s2532_s6 = scalar_select %p2041_p12, 1, 0 }
  0x18   : > { %p1622_p1 = pneg %p2045_p13  ;;  %s183_s9 = sshll.u32 %s1942_s8, 4  ;;  %s184_s9 = int_to_ptr.vmem [resolvable:$true] %s183_s9 }
  0x19   : > { %s1943_s11 = smov [#allocation8]   ;;  %s1771_s13 = scalar_lea.vmem %s184_s9, 1024 }
  0x1a   : > { %p2053_p2 = pnand %p1622_p1, %p2526_p4  ;;  %s196_s12 = sshll.u32 %s1943_s11, 4  ;;  %s197_s12 = int_to_ptr.vmem [resolvable:$true] %s196_s12 }
  0x1b   : > { %p1772_p3 = scmp.ne.s32.totalorder %s184_s9, %s1771_s13  ;;  %p1779_p9 = scmp.lt.s32.totalorder %s184_s9, %s184_s9 }
  0x1c   : > { %p1762_p0 = pneg %p2053_p2  ;;  %p1780_p10 = scmp.lt.s32.totalorder %s1771_s13, %s1771_s13 }
  0x1e   : > { %p1774_p7 = pnand %p1772_p3, %p1762_p0  ;;  %p1781_p12 = por %p1780_p10, %p1779_p9 }
  0x20   : > { %p1775_p8 = pneg %p1774_p7 }
  0x22   : > { %p1782_p1 = pnand %p1781_p12, %p1775_p8 }
  0x24   : > { %1785 = shalt.err (!%p1782_p1)
}
  0x25   : > { %s1944_s14 = smov 64   ;;  %s1945_s15 = smov 4  }
  0x26   : > { %s2535_s2 = sld [smem:[#allocation16_spill]]  ;;  %s1797_s23 = scalar_lea.vmem %s197_s12, 1024 }
  0x27   : > { %p1798_p4 = scmp.ne.s32.totalorder %s197_s12, %s1797_s23  ;;  %p1805_p11 = scmp.lt.s32.totalorder %s197_s12, %s197_s12 }
  0x28   : > { %p1806_p6 = scmp.lt.s32.totalorder %s1797_s23, %s1797_s23 }
  0x29   : > { %p1800_p3 = pnand %p1798_p4, %p1762_p0 }
  0x2a   : > { %p1807_p9 = por %p1806_p6, %p1805_p11 }
  0x2b   : > { %p1801_p7 = pneg %p1800_p3 }
  0x2c   : > { %1625 = dma.hbm_to_vmem [thread:$0]  (!%p2053_p2), %s2535_s2, 1024, %s184_s9, [#allocation6], %s1944_s14, %s1944_s14, %s1945_s15  }
  0x2d   : > { %p1808_p12 = pnand %p1807_p9, %p1801_p7 }
  0x2f   : > { %1811 = shalt.err (!%p1808_p12)
}
  0x30   : > { %1628 = dma.hbm_to_vmem [thread:$0]  (!%p2053_p2), %s2523_s3, 1024, %s197_s12, [#allocation9], %s1944_s14, %s1944_s14, %s1945_s15  }
  0x31   : > { %p1417_p8 = scmp.ge.s32.totalorder %s1940_s21, 3 }
  0x33   : > { %209 = sbr.rel (%p1417_p8) target bundleno = 120 (0x78), region = 28 }
  0x38   : > { %212 = sbr.rel (!%p2024_p5) target bundleno = 88 (0x58), region = 32  ;;  %s213_s8 = sand.u32 (%p2024_p5), 1, %s1936_s20  }
  0x39   : > { %s1419_s9 = sshll.u32 (%p2024_p5), %s1940_s21, 5  ;;  %s1418_s11 = sshll.u32 (%p2024_p5), %s213_s8, 8 }
  0x3a   : > { %s219_s13 = ssub.s32 (%p2024_p5), 75, %s1419_s9  ;;  %s2083_s17 = scalar_lea.sflag (%p2024_p5), [#allocation3], %s213_s8 }
  0x3b   : > { %p220_p4 = scmp.lt.s32.totalorder (%p2024_p5), %s219_s13, 32  ;;  %s217_s12 = scalar_lea.vmem (%p2024_p5), [#allocation2], %s1418_s11 }
  0x3d   : > { %s2548_s13 = smov (!%p220_p4, %s219_s13), 32 }
  0x3e   : > { %s2080_s16 = sshll.u32 %s2548_s13, 7 }
  0x3f   : > { %s224_s10 = ssub.s32 4096, %s2080_s16 }
  0x40   : > { %225 = vsyncadd %s2083_s17, %s224_s10  ;;  %p1421_p6 = scmp.ne.s32.totalorder %s2080_s16, 0  ;;  %s1464_s14 = sshll.u32 %s1940_s21, 12 }
  0x41   : > { %s2091_s25 = scalar_lea.hbm %s2520_s0, %s1464_s14  ;;  %s230_s26 = sshll.u32 %s217_s12, 4  ;;  %s2093_s26 = int_to_ptr.vmem [resolvable:$true] %s230_s26 }
  0x42   : > { %s1812_s8 = scalar_lea.hbm %s2091_s25, %s2080_s16  ;;  %s1816_s13 = scalar_lea.hbm %s2520_s0, 9600 }
  0x43   : > { %p1813_p11 = scmp.ne.s32.totalorder %s2091_s25, %s1812_s8  ;;  %p1817_p10 = scmp.lt.s32.totalorder %s2091_s25, %s2520_s0 }
  0x44   : > { %p1818_p1 = scmp.lt.s32.totalorder %s1816_s13, %s1812_s8 }
  0x45   : > { %p1814_p2 = pnand %p1813_p11, %p1421_p6 }
  0x46   : > { %p1819_p3 = por %p1818_p1, %p1817_p10 }
  0x47   : > { %p1815_p0 = pneg %p1814_p2 }
  0x49   : > { %p1820_p7 = pnand %p1819_p3, %p1815_p0 }
  0x4b   : > { %1823 = shalt.err (!%p1820_p7)
}
  0x4c   : > { %s1824_s12 = scalar_lea.vmem %s2093_s26, %s2080_s16  ;;  %s1946_s14 = smov [#allocation2]  }
  0x4d   : > { %p1825_p9 = scmp.ne.s32.totalorder %s2093_s26, %s1824_s12  ;;  %s1828_s15 = sshll.u32 %s1946_s14, 4  ;;  %s1829_s15 = int_to_ptr.vmem [resolvable:$false] %s1828_s15 }
  0x4e   : > { %s1830_s23 = scalar_lea.vmem %s1829_s15, 8192  ;;  %p1831_p4 = scmp.lt.s32.totalorder %s2093_s26, %s1829_s15 }
  0x4f   : > { %p1826_p12 = pnand %p1825_p9, %p1421_p6  ;;  %p1832_p11 = scmp.lt.s32.totalorder %s1830_s23, %s1824_s12 }
  0x51   : > { %p1827_p8 = pneg %p1826_p12  ;;  %p1833_p2 = por %p1832_p11, %p1831_p4 }
  0x53   : > { %p1834_p10 = pnand %p1833_p2, %p1827_p8 }
  0x55   : > { %1837 = shalt.err (!%p1834_p10)
}
  0x56   : > { %s1947_s2 = smov 128   ;;  %s1948_s8 = smov 8  }
  0x57   : > { %236 = dma.hbm_to_vmem [thread:$0]  (%p1421_p6), %s2091_s25, %s2080_s16, %s2093_s26, %s2083_s17, %s1947_s2, %s1947_s2, %s1948_s8  }
  0x58 PF: > { %239 = sbr.rel (!%p2024_p5) target bundleno = 120 (0x78), region = 36  ;;  %s240_s9 = sand.u32 (%p2024_p5), 1, %s1940_s21  }
  0x59   : > { %s242_s11 = sand.u32 (%p2024_p5), 1, %s1936_s20   ;;  %s1426_s10 = sshll.u32 (%p2024_p5), %s1940_s21, 5 }
  0x5a   : > { %s1425_s13 = sshll.u32 (%p2024_p5), %s242_s11, 8  ;;  %s246_s12 = ssub.s32 (%p2024_p5), 75, %s1426_s10 }
  0x5b   : > { %p247_p0 = scmp.lt.s32.totalorder (%p2024_p5), %s246_s12, 32  ;;  %s2127_s23 = scalar_lea.sflag (%p2024_p5), [#allocation6], %s240_s9 }
  0x5c   : > { %s244_s16 = scalar_lea.vmem (%p2024_p5), [#allocation5], %s1425_s13 }
  0x5d   : > { %s2550_s12 = smov (!%p247_p0, %s246_s12), 32 }
  0x5e   : > { %s2124_s14 = sshll.u32 %s2550_s12, 7 }
  0x5f   : > { %s251_s15 = ssub.s32 4096, %s2124_s14 }
  0x60   : > { %252 = vsyncadd %s2127_s23, %s251_s15  ;;  %p1428_p5 = scmp.ne.s32.totalorder %s2124_s14, 0  ;;  %s1465_s28 = sshll.u32 %s1940_s21, 12 }
  0x61   : > { %s2135_s26 = scalar_lea.hbm %s2521_s1, %s1465_s28  ;;  %s257_s2 = sshll.u32 %s244_s16, 4  ;;  %s2137_s2 = int_to_ptr.vmem [resolvable:$true] %s257_s2 }
  0x62   : > { %s1838_s8 = scalar_lea.hbm %s2135_s26, %s2124_s14  ;;  %s1842_s13 = scalar_lea.hbm %s2521_s1, 9600 }
  0x63   : > { %p1839_p6 = scmp.ne.s32.totalorder %s2135_s26, %s1838_s8  ;;  %p1843_p7 = scmp.lt.s32.totalorder %s2135_s26, %s2521_s1 }
  0x64   : > { %p1844_p9 = scmp.lt.s32.totalorder %s1842_s13, %s1838_s8 }
  0x65   : > { %p1840_p1 = pnand %p1839_p6, %p1428_p5 }
  0x66   : > { %p1845_p12 = por %p1844_p9, %p1843_p7 }
  0x67   : > { %p1841_p3 = pneg %p1840_p1 }
  0x69   : > { %p1846_p8 = pnand %p1845_p12, %p1841_p3 }
  0x6b   : > { %1849 = shalt.err (!%p1846_p8)
}
  0x6c   : > { %s1850_s15 = scalar_lea.vmem %s2137_s2, %s2124_s14  ;;  %s1949_s16 = smov [#allocation5]  }
  0x6d   : > { %p1851_p4 = scmp.ne.s32.totalorder %s2137_s2, %s1850_s15  ;;  %s1854_s28 = sshll.u32 %s1949_s16, 4  ;;  %s1855_s28 = int_to_ptr.vmem [resolvable:$false] %s1854_s28 }
  0x6e   : > { %s1856_s17 = scalar_lea.vmem %s1855_s28, 8192  ;;  %p1857_p10 = scmp.lt.s32.totalorder %s2137_s2, %s1855_s28 }
  0x6f   : > { %p1852_p11 = pnand %p1851_p4, %p1428_p5  ;;  %p1858_p0 = scmp.lt.s32.totalorder %s1856_s17, %s1850_s15 }
  0x71   : > { %p1853_p2 = pneg %p1852_p11  ;;  %p1859_p6 = por %p1858_p0, %p1857_p10 }
  0x73   : > { %p1860_p1 = pnand %p1859_p6, %p1853_p2 }
  0x75   : > { %1863 = shalt.err (!%p1860_p1)
}
  0x76   : > { %s1950_s25 = smov 128   ;;  %s1951_s8 = smov 8  }
  0x77   : > { %263 = dma.hbm_to_vmem [thread:$0]  (%p1428_p5), %s2135_s26, %s2124_s14, %s2137_s2, %s2127_s23, %s1950_s25, %s1950_s25, %s1951_s8  }
  0x78 PF: > { %269 = sbr.rel (%p2045_p13) target bundleno = 623 (0x26f), region = 40  ;;  %s2166_s9 = sand.u32 (!%p2045_p13), 1, %s1932_s19  }
  0x79   : > { %s2169_s11 = sshll.u32 (!%p2045_p13), %s2166_s9, 8  ;;  %s272_s13 = scalar_lea.sflag (!%p2045_p13), [#allocation3], %s2166_s9 }
  0x7a   : > { %s2173_s10 = scalar_lea.vmem (!%p2045_p13), [#allocation2], %s2169_s11  ;;  %p2536_p3 = scmp.ne.s32.totalorder (!%p2045_p13), %s2530_s29, 0 }
  0x7d   : > { %1907 = dma.done.wait (%p2536_p3), %s272_s13, 4096  }
  0x7e   : > { %1909 = vsyncadd (%p2536_p3), %s272_s13, 4294963200  ;;  %s280_s7 = sand.u32 1, %s2006_s22   ;;  %s2181_s23 = scalar_lea.vmem [#allocation5], %s2169_s11 }
  0x7f   : > { %s281_s14 = scalar_lea.sflag [#allocation6], %s280_s7 }
  0x80   : > { %1911 = dma.done.wait (%p2536_p3), %s281_s14, 4096  }
  0x81   : > { %1913 = vsyncadd (%p2536_p3), %s281_s14, 4294963200  ;;  %p2537_p13 = scmp.eq.s32.totalorder %s2006_s22, 0 }
  0x83   : > { %1915 = dma.done.wait (%p2537_p13), [#allocation6], 1024   ;;  %p2538_p5 = pmov %p2537_p13 }
  0x85   : > { %1917 = vsyncadd (%p2538_p5), [#allocation6], 4294966272  ;;  %p2539_p7 = pmov %p2538_p5 }
  0x86   : > { %p2540_p9 = pmov %p2538_p5 }
  0x87   : > { %1919 = dma.done.wait (%p2539_p7), [#allocation9], 1024  }
  0x88   : > { %1921 = vsyncadd (%p2540_p9), [#allocation9], 4294966272  ;;  %v1680_v0 = vld [vmem:[#allocation8 + $0x38] sm:$0xff]   ;;  %v1682_v2 = vld [vmem:[#allocation8 + $0x30] sm:$0xff]   ;;  %s2394_s2 = scalar_lea.vmem [#allocation10], %s2169_s11  ;;  %s1279_s12 = scalar_lea.sflag [#allocation4], %s2166_s9 }
  0x89   : > { %v1681_v1 = vld [vmem:[#allocation7 + $0x38] sm:$0xff]   ;;  %1515 = vmatprep.subr.bf16.mxu0 %v1680_v0  ;;  %v1683_v3 = vld [vmem:[#allocation7 + $0x30] sm:$0xff]   ;;  %v1684_v4 = vld [vmem:[#allocation8 + $0x28] sm:$0xff]   ;;  %p2541_p12 = scmp.ne.s32.totalorder %s2531_s30, 0 }
  0x8a   : > { %1563 = vmatprep.subr.bf16.mxu1 %v1681_v1  ;;  %1516 = vmatpush3.bf16.msra.mxu0 %v1680_v0  ;;  %v1685_v5 = vld [vmem:[#allocation7 + $0x28] sm:$0xff]   ;;  %v1686_v6 = vld [vmem:[#allocation8 + $0x20] sm:$0xff]   ;;  %v1688_v8 = vld [vmem:[#allocation8 + $0x18] sm:$0xff]   ;;  %s1456_s15 = sshll.u32 (%p2541_p12), %s2006_s22, 5 }
  0x8b   : > { %1564 = vmatpush3.bf16.msra.mxu1 %v1681_v1  ;;  %1517 = vmatprep.subr.bf16.mxu0 %v1682_v2  ;;  %v1687_v7 = vld [vmem:[#allocation7 + $0x20] sm:$0xff]   ;;  %v1689_v9 = vld [vmem:[#allocation7 + $0x18] sm:$0xff]   ;;  %v1690_v10 = vld [vmem:[#allocation8 + $0x10] sm:$0xff]   ;;  %s1287_s16 = ssub.s32 (%p2541_p12), 75, %s1456_s15 }
  0x8c   : > { %1565 = vmatprep.subr.bf16.mxu1 %v1683_v3  ;;  %v2196_v11 = vld [vmem:[%s2181_s23] sm:$0xff]  ;;  %v2199_v12 = vld [vmem:[%s2181_s23 + $0x8] sm:$0xff]  ;;  %v1691_v14 = vld [vmem:[#allocation7 + $0x10] sm:$0xff]   ;;  %p1288_p8 = scmp.lt.s32.totalorder (%p2541_p12), %s1287_s16, 32 }
  0x8d   : > { %v340_v13 = vld [vmem:[%s2173_s10] sm:$0xff]  ;;  %v452_v15 = vmax.f32 %v2196_v11, 0.0  ;;  %v453_v16 = vmax.f32 %v2199_v12, 0.0  ;;  %v341_v17 = vld [vmem:[%s2173_s10 + $0x8] sm:$0xff]  ;;  %v2206_v25 = vld [vmem:[%s2181_s23 + $0x10] sm:$0xff] }
  0x8e   : > { %1518 = vmatpush3.bf16.msra.mxu0 %v1682_v2  ;;  %v372_v18 = vmax.f32 %v340_v13, 0.0  ;;  %v373_v19 = vmax.f32 %v341_v17, 0.0  ;;  %v1692_v21 = vld [vmem:[#allocation8 + $0x8] sm:$0xff]   ;;  %v1694_v24 = vld [vmem:[#allocation8] sm:$0xff]   ;;  %v2209_v26 = vld [vmem:[%s2181_s23 + $0x18] sm:$0xff]  ;;  %v454_v34 = vmax.f32 %v2206_v25, 0.0 }
  0x8f   : > { %1566 = vmatpush3.bf16.msra.mxu1 %v1683_v3  ;;  %1519 = vmatprep.subr.bf16.mxu0 %v1684_v4  ;;  %v484_v20 = vpack.c.bf16 %v453_v16, %v452_v15  ;;  %v1693_v23 = vld [vmem:[#allocation7 + $0x8] sm:$0xff]   ;;  %v342_v27 = vld [vmem:[%s2173_s10 + $0x10] sm:$0xff]  ;;  %v343_v28 = vld [vmem:[%s2173_s10 + $0x18] sm:$0xff]  ;;  %v455_v35 = vmax.f32 %v2209_v26, 0.0 }
  0x90   : > { %1567 = vmatprep.subr.bf16.mxu1 %v1685_v5  ;;  %v404_v22 = vpack.c.bf16 %v373_v19, %v372_v18  ;;  %v2214_v29 = vld [vmem:[%s2181_s23 + $0x20] sm:$0xff]  ;;  %v2217_v30 = vld [vmem:[%s2181_s23 + $0x28] sm:$0xff]  ;;  %v374_v36 = vmax.f32 %v342_v27, 0.0  ;;  %v375_v37 = vmax.f32 %v343_v28, 0.0  ;;  %v2226_v45 = vld [vmem:[%s2181_s23 + $0x30] sm:$0xff] }
  0x91   : > { %1531 = vmatprep.mubr.bf16.mxu0 %v484_v20  ;;  %v1695_v31 = vld [vmem:[#allocation7] sm:$0xff]   ;;  %v345_v33 = vld [vmem:[%s2173_s10 + $0x28] sm:$0xff]  ;;  %v456_v38 = vmax.f32 %v2214_v29, 0.0  ;;  %v457_v39 = vmax.f32 %v2217_v30, 0.0  ;;  %v485_v42 = vpack.c.bf16 %v455_v35, %v454_v34  ;;  %v2229_v46 = vld [vmem:[%s2181_s23 + $0x38] sm:$0xff]  ;;  %v458_v54 = vmax.f32 %v2226_v45, 0.0 }
  0x92   : > { %1520 = vmatpush3.bf16.msra.mxu0 %v1684_v4  ;;  %1579 = vmatprep.mubr.bf16.mxu1 %v404_v22  ;;  %v344_v32 = vld [vmem:[%s2173_s10 + $0x20] sm:$0xff]  ;;  %v377_v41 = vmax.f32 %v345_v33, 0.0  ;;  %v405_v43 = vpack.c.bf16 %v375_v37, %v374_v36  ;;  %v346_v47 = vld [vmem:[%s2173_s10 + $0x30] sm:$0xff]  ;;  %v347_v49 = vld [vmem:[%s2173_s10 + $0x38] sm:$0xff]  ;;  %v459_v55 = vmax.f32 %v2229_v46, 0.0 }
  0x93   : > { %1568 = vmatpush3.bf16.msra.mxu1 %v1685_v5  ;;  %1521 = vmatprep.subr.bf16.mxu0 %v1686_v6  ;;  %v376_v40 = vmax.f32 %v344_v32, 0.0  ;;  %v486_v44 = vpack.c.bf16 %v457_v39, %v456_v38  ;;  %v2234_v50 = vld [vmem:[%s2181_s23 + $0x40] sm:$0xff]  ;;  %v2237_v51 = vld [vmem:[%s2181_s23 + $0x48] sm:$0xff]  ;;  %v378_v56 = vmax.f32 %v346_v47, 0.0  ;;  %v379_v57 = vmax.f32 %v347_v49, 0.0  ;;  %v2246_v1 = vld [vmem:[%s2181_s23 + $0x50] sm:$0xff] }
  0x94   : > { %1569 = vmatprep.subr.bf16.mxu1 %v1687_v7  ;;  %v348_v52 = vld [vmem:[%s2173_s10 + $0x40] sm:$0xff]  ;;  %v349_v53 = vld [vmem:[%s2173_s10 + $0x48] sm:$0xff]  ;;  %v460_v58 = vmax.f32 %v2234_v50, 0.0  ;;  %v461_v59 = vmax.f32 %v2237_v51, 0.0  ;;  %v487_v62 = vpack.c.bf16 %v459_v55, %v458_v54  ;;  %v2249_v2 = vld [vmem:[%s2181_s23 + $0x58] sm:$0xff] }
  0x95   : > { %v406_v48 = vpack.c.bf16 %v377_v41, %v376_v40  ;;  %v380_v60 = vmax.f32 %v348_v52, 0.0  ;;  %v381_v61 = vmax.f32 %v349_v53, 0.0  ;;  %v407_v63 = vpack.c.bf16 %v379_v57, %v378_v56  ;;  %v350_v3 = vld [vmem:[%s2173_s10 + $0x50] sm:$0xff]  ;;  %v351_v5 = vld [vmem:[%s2173_s10 + $0x58] sm:$0xff]  ;;  %v2274_v32 = vld [vmem:[%s2181_s23 + $0x80] sm:$0xff] }
  0x96   : > { %1522 = vmatpush3.bf16.msra.mxu0 %v1686_v6  ;;  %v488_v0 = vpack.c.bf16 %v461_v59, %v460_v58  ;;  %v2254_v6 = vld [vmem:[%s2181_s23 + $0x60] sm:$0xff]  ;;  %v463_v13 = vmax.f32 %v2249_v2, 0.0  ;;  %v383_v15 = vmax.f32 %v351_v5, 0.0  ;;  %v354_v27 = vld [vmem:[%s2173_s10 + $0x70] sm:$0xff]  ;;  %v2277_v33 = vld [vmem:[%s2181_s23 + $0x88] sm:$0xff]  ;;  %v468_v40 = vmax.f32 %v2274_v32, 0.0 }
  0x97   : > { %1570 = vmatpush3.bf16.msra.mxu1 %v1687_v7  ;;  %1523 = vmatprep.subr.bf16.mxu0 %v1688_v8  ;;  %v408_v4 = vpack.c.bf16 %v381_v61, %v380_v60  ;;  %v2257_v7 = vld [vmem:[%s2181_s23 + $0x68] sm:$0xff]  ;;  %v464_v16 = vmax.f32 %v2254_v6, 0.0  ;;  %v356_v34 = vld [vmem:[%s2173_s10 + $0x80] sm:$0xff]  ;;  %v386_v38 = vmax.f32 %v354_v27, 0.0  ;;  %v469_v41 = vmax.f32 %v2277_v33, 0.0  ;;  %v2286_v49 = vld [vmem:[%s2181_s23 + $0x90] sm:$0xff] }
  0x98   : > { %1571 = vmatprep.subr.bf16.mxu1 %v1689_v9  ;;  %v465_v17 = vmax.f32 %v2257_v7, 0.0  ;;  %v357_v35 = vld [vmem:[%s2173_s10 + $0x88] sm:$0xff]  ;;  %v2289_v52 = vld [vmem:[%s2181_s23 + $0x98] sm:$0xff]  ;;  %v358_v53 = vld [vmem:[%s2173_s10 + $0x90] sm:$0xff]  ;;  %v470_v60 = vmax.f32 %v2286_v49, 0.0 }
  0x99   : > { %v359_v55 = vld [vmem:[%s2173_s10 + $0x98] sm:$0xff]  ;;  %v2294_v56 = vld [vmem:[%s2181_s23 + $0xa0] sm:$0xff]  ;;  %v2297_v57 = vld [vmem:[%s2181_s23 + $0xa8] sm:$0xff]  ;;  %v471_v61 = vmax.f32 %v2289_v52, 0.0 }
  0x9a   : > { %1524 = vmatpush3.bf16.msra.mxu0 %v1688_v8  ;;  %v352_v8 = vld [vmem:[%s2173_s10 + $0x60] sm:$0xff]  ;;  %v490_v22 = vpack.c.bf16 %v465_v17, %v464_v16  ;;  %v361_v59 = vld [vmem:[%s2173_s10 + $0xa8] sm:$0xff]  ;;  %v363_v17 = vld [vmem:[%s2173_s10 + $0xb8] sm:$0xff] }
  0x9b   : > { %1572 = vmatpush3.bf16.msra.mxu1 %v1689_v9  ;;  %1525 = vmatprep.subr.bf16.mxu0 %v1690_v10  ;;  %v353_v9 = vld [vmem:[%s2173_s10 + $0x68] sm:$0xff]  ;;  %v384_v18 = vmax.f32 %v352_v8, 0.0  ;;  %v360_v58 = vld [vmem:[%s2173_s10 + $0xa0] sm:$0xff]  ;;  %v393_v5 = vmax.f32 %v361_v59, 0.0  ;;  %v493_v8 = vpack.c.bf16 %v471_v61, %v470_v60 }
  0x9c   : > { %1573 = vmatprep.subr.bf16.mxu1 %v1691_v14  ;;  %v385_v19 = vmax.f32 %v353_v9, 0.0 }
  0x9e   : > { %1526 = vmatpush3.bf16.msra.mxu0 %v1690_v10  ;;  %v462_v10 = vmax.f32 %v2246_v1, 0.0  ;;  %v410_v28 = vpack.c.bf16 %v385_v19, %v384_v18  ;;  %v2314_v18 = vld [vmem:[%s2181_s23 + $0xc0] sm:$0xff]  ;;  %v2317_v19 = vld [vmem:[%s2181_s23 + $0xc8] sm:$0xff] }
  0x9f   : > { %1574 = vmatpush3.bf16.msra.mxu1 %v1691_v14  ;;  %1527 = vmatprep.subr.bf16.mxu0 %v1692_v21  ;;  %v382_v14 = vmax.f32 %v350_v3, 0.0  ;;  %v473_v3 = vmax.f32 %v2297_v57, 0.0 }
  0xa0   : > { %1575 = vmatprep.subr.bf16.mxu1 %v1693_v23  ;;  %v489_v20 = vpack.c.bf16 %v463_v13, %v462_v10  ;;  %v2306_v13 = vld [vmem:[%s2181_s23 + $0xb0] sm:$0xff] }
  0xa2   : > { %1528 = vmatpush3.bf16.msra.mxu0 %v1692_v21  ;;  %v409_v21 = vpack.c.bf16 %v383_v15, %v382_v14  ;;  %v2309_v14 = vld [vmem:[%s2181_s23 + $0xb8] sm:$0xff]  ;;  %v362_v15 = vld [vmem:[%s2173_s10 + $0xb0] sm:$0xff] }
  0xa3   : > { %1576 = vmatpush3.bf16.msra.mxu1 %v1693_v23  ;;  %1529 = vmatprep.subr.bf16.mxu0 %v1694_v24  ;;  %v2266_v23 = vld [vmem:[%s2181_s23 + $0x70] sm:$0xff]  ;;  %v475_v27 = vmax.f32 %v2309_v14, 0.0 }
  0xa4   : > { %1577 = vmatprep.subr.bf16.mxu1 %v1695_v31  ;;  %v466_v36 = vmax.f32 %v2266_v23, 0.0 }
  0xa6   : > { %1530 = vmatpush3.bf16.msra.mxu0 %v1694_v24  ;;  %v2269_v24 = vld [vmem:[%s2181_s23 + $0x78] sm:$0xff] }
  0xa7   : > { %1578 = vmatpush3.bf16.msra.mxu1 %v1695_v31  ;;  %v355_v31 = vld [vmem:[%s2173_s10 + $0x78] sm:$0xff]  ;;  %v467_v37 = vmax.f32 %v2269_v24, 0.0 }
  0xa8   : > { %v387_v39 = vmax.f32 %v355_v31, 0.0  ;;  %v395_v31 = vmax.f32 %v363_v17, 0.0  ;;  %v371_v17 = vld [vmem:[%s2173_s10 + $0xf8] sm:$0xff] }
  0xa9   : > { %1532 = vmatmul.mubr.bf16.vlgmr.msra.gmra.mxu0 %v485_v42  ;;  %v388_v42 = vmax.f32 %v356_v34, 0.0  ;;  %v476_v34 = vmax.f32 %v2314_v18, 0.0 }
  0xaa   : > { %1580 = vmatmul.mubr.bf16.vlgmr.msra.gmra.mxu1 %v405_v43  ;;  %1535 = vmatprep.mubr.bf16.mxu0 %v486_v44  ;;  %v389_v43 = vmax.f32 %v357_v35, 0.0  ;;  %v491_v44 = vpack.c.bf16 %v467_v37, %v466_v36  ;;  %v411_v47 = vpack.c.bf16 %v387_v39, %v386_v38  ;;  %v477_v35 = vmax.f32 %v2317_v19, 0.0 }
  0xab   : > { %1583 = vmatprep.mubr.bf16.mxu1 %v406_v48  ;;  %v492_v48 = vpack.c.bf16 %v469_v41, %v468_v40  ;;  %v2326_v41 = vld [vmem:[%s2181_s23 + $0xd0] sm:$0xff] }
  0xac   : > { %v412_v54 = vpack.c.bf16 %v389_v43, %v388_v42  ;;  %v496_v40 = vpack.c.bf16 %v477_v35, %v476_v34  ;;  %v2329_v42 = vld [vmem:[%s2181_s23 + $0xd8] sm:$0xff]  ;;  %v366_v43 = vld [vmem:[%s2173_s10 + $0xd0] sm:$0xff] }
  0xad   : > { %v479_v59 = vmax.f32 %v2329_v42, 0.0  ;;  %v398_v60 = vmax.f32 %v366_v43, 0.0 }
  0xb1   : > { %1536 = vmatmul.mubr.bf16.gmra.mxu0 %v487_v62  ;;  %v390_v62 = vmax.f32 %v358_v53, 0.0  ;;  %v2337_v53 = vld [vmem:[%s2181_s23 + $0xe8] sm:$0xff] }
  0xb2   : > { %1584 = vmatmul.mubr.bf16.gmra.mxu1 %v407_v63  ;;  %1539 = vmatprep.mubr.bf16.mxu0 %v488_v0  ;;  %v391_v63 = vmax.f32 %v359_v55, 0.0  ;;  %v472_v0 = vmax.f32 %v2294_v56, 0.0  ;;  %v369_v55 = vld [vmem:[%s2173_s10 + $0xe8] sm:$0xff] }
  0xb3   : > { %1587 = vmatprep.mubr.bf16.mxu1 %v408_v4  ;;  %v392_v4 = vmax.f32 %v360_v58, 0.0  ;;  %v478_v58 = vmax.f32 %v2326_v41, 0.0 }
  0xb4   : > { %v413_v9 = vpack.c.bf16 %v391_v63, %v390_v62  ;;  %v494_v10 = vpack.c.bf16 %v473_v3, %v472_v0  ;;  %v481_v63 = vmax.f32 %v2337_v53, 0.0  ;;  %v401_v3 = vmax.f32 %v369_v55, 0.0 }
  0xb5   : > { %v414_v16 = vpack.c.bf16 %v393_v5, %v392_v4  ;;  %v497_v4 = vpack.c.bf16 %v479_v59, %v478_v58 }
  0xb9   : > { %1540 = vmatmul.mubr.bf16.gmra.mxu0 %v489_v20  ;;  %v364_v20 = vld [vmem:[%s2173_s10 + $0xc0] sm:$0xff] }
  0xba   : > { %1588 = vmatmul.mubr.bf16.gmra.mxu1 %v409_v21  ;;  %1543 = vmatprep.mubr.bf16.mxu0 %v490_v22  ;;  %v365_v21 = vld [vmem:[%s2173_s10 + $0xc8] sm:$0xff]  ;;  %v474_v22 = vmax.f32 %v2306_v13, 0.0  ;;  %v396_v36 = vmax.f32 %v364_v20, 0.0 }
  0xbb   : > { %1591 = vmatprep.mubr.bf16.mxu1 %v410_v28  ;;  %v394_v28 = vmax.f32 %v362_v15, 0.0  ;;  %v397_v37 = vmax.f32 %v365_v21, 0.0 }
  0xbc   : > { %v495_v38 = vpack.c.bf16 %v475_v27, %v474_v22  ;;  %v403_v27 = vmax.f32 %v371_v17, 0.0 }
  0xbd   : > { %v415_v39 = vpack.c.bf16 %v395_v31, %v394_v28 }
  0xc1   : > { %1544 = vmatmul.mubr.bf16.gmra.mxu0 %v491_v44  ;;  %v416_v44 = vpack.c.bf16 %v397_v37, %v396_v36  ;;  %v2358_v36 = vld [vmem:[%s2524_s4] ss:$0 sm:$0xff] }
  0xc2   : > { %1592 = vmatmul.mubr.bf16.gmra.mxu1 %v411_v47  ;;  %1547 = vmatprep.mubr.bf16.mxu0 %v492_v48  ;;  %v367_v47 = vld [vmem:[%s2173_s10 + $0xd8] sm:$0xff]  ;;  %v2334_v48 = vld [vmem:[%s2181_s23 + $0xe0] sm:$0xff] }
  0xc3   : > { %1595 = vmatprep.mubr.bf16.mxu1 %v412_v54  ;;  %v368_v54 = vld [vmem:[%s2173_s10 + $0xe0] sm:$0xff]  ;;  %v399_v61 = vmax.f32 %v367_v47, 0.0  ;;  %v480_v62 = vmax.f32 %v2334_v48, 0.0 }
  0xc4   : > { %v400_v0 = vmax.f32 %v368_v54, 0.0 }
  0xc5   : > { %v417_v5 = vpack.c.bf16 %v399_v61, %v398_v60 }
  0xc6   : > { %v418_v15 = vpack.c.bf16 %v401_v3, %v400_v0 }
  0xc9   : > { %1548 = vmatmul.mubr.bf16.gmra.mxu0 %v493_v8  ;;  %v498_v8 = vpack.c.bf16 %v481_v63, %v480_v62 }
  0xca   : > { %1596 = vmatmul.mubr.bf16.gmra.mxu1 %v413_v9  ;;  %1551 = vmatprep.mubr.bf16.mxu0 %v494_v10  ;;  %v2346_v9 = vld [vmem:[%s2181_s23 + $0xf0] sm:$0xff]  ;;  %v2349_v10 = vld [vmem:[%s2181_s23 + $0xf8] sm:$0xff] }
  0xcb   : > { %1599 = vmatprep.mubr.bf16.mxu1 %v414_v16  ;;  %v370_v16 = vld [vmem:[%s2173_s10 + $0xf0] sm:$0xff]  ;;  %v482_v20 = vmax.f32 %v2346_v9, 0.0  ;;  %v483_v21 = vmax.f32 %v2349_v10, 0.0 }
  0xcc   : > { %v402_v22 = vmax.f32 %v370_v16, 0.0 }
  0xcd   : > { %v499_v28 = vpack.c.bf16 %v483_v21, %v482_v20 }
  0xce   : > { %v419_v31 = vpack.c.bf16 %v403_v27, %v402_v22 }
  0xd1   : > { %1552 = vmatmul.mubr.bf16.gmra.mxu0 %v495_v38 }
  0xd2   : > { %1600 = vmatmul.mubr.bf16.gmra.mxu1 %v415_v39  ;;  %1555 = vmatprep.mubr.bf16.mxu0 %v496_v40 }
  0xd3   : > { %1603 = vmatprep.mubr.bf16.mxu1 %v416_v44 }
  0xd9   : > { %1556 = vmatmul.mubr.bf16.gmra.mxu0 %v497_v4 }
  0xda   : > { %1604 = vmatmul.mubr.bf16.gmra.mxu1 %v417_v5  ;;  %1559 = vmatprep.mubr.bf16.mxu0 %v498_v8 }
  0xdb   : > { %1607 = vmatprep.mubr.bf16.mxu1 %v418_v15 }
  0xe1   : > { %1560 = vmatmul.mubr.bf16.gmra.mxu0 %v499_v28 }
  0xe2   : > { %1608 = vmatmul.mubr.bf16.gmra.mxu1 %v419_v31 }
 0x169   : > { %v1533_v34 = vpop.f32.mrf.mxu0 }
 0x16a   : > { %v1581_v35 = vpop.f32.mrf.mxu1 }
 0x16b   : > { %v832_v37 = vadd.f32 %v1581_v35, %v1533_v34  ;;  %v614_v38 = vpop.f32.mrf.mxu0 }
 0x16c   : > { %v823_v39 = vpop.f32.mrf.mxu1 }
 0x16d   : > { %v959_v40 = vadd.f32 %v2358_v36, %v832_v37  ;;  %v824_v43 = vadd.f32 %v823_v39, %v614_v38  ;;  %v1534_v44 = vpop.f32.mrf.mxu0 }
 0x16e   : > { %v1582_v47 = vpop.f32.mrf.mxu1 }
 0x16f   : > { %v991_v54 = vmul.f32 0.5, %v959_v40  ;;  %v957_v55 = vadd.f32 %v2358_v36, %v824_v43  ;;  %v835_v58 = vadd.f32 %v1582_v47, %v1534_v44  ;;  %v617_v59 = vpop.f32.mrf.mxu0 }
 0x170   : > { %v826_v60 = vpop.f32.mrf.mxu1 }
 0x171   : > { %v989_v61 = vmul.f32 0.5, %v957_v55  ;;  %v960_v62 = vadd.f32 %v2358_v36, %v835_v58  ;;  %v827_v63 = vadd.f32 %v826_v60, %v617_v59  ;;  %v1537_v0 = vpop.f32.mrf.mxu0  ;;  %1696 = vtanh.f32 %v991_v54 }
 0x172   : > { %v1585_v3 = vpop.f32.mrf.mxu1 }
 0x173   : > { %v992_v4 = vmul.f32 0.5, %v960_v62  ;;  %v958_v5 = vadd.f32 %v2358_v36, %v827_v63  ;;  %v848_v8 = vadd.f32 %v1585_v3, %v1537_v0  ;;  %v630_v15 = vpop.f32.mrf.mxu0  ;;  %1698 = vtanh.f32 %v989_v61 }
 0x174   : > { %v839_v16 = vpop.f32.mrf.mxu1 }
 0x175   : > { %1700 = vtanh.f32 %v992_v4  ;;  %v990_v17 = vmul.f32 0.5, %v958_v5  ;;  %v963_v20 = vadd.f32 %v2358_v36, %v848_v8  ;;  %v840_v21 = vadd.f32 %v839_v16, %v630_v15  ;;  %v1538_v22 = vpop.f32.mrf.mxu0 }
 0x176   : > { %v1586_v27 = vpop.f32.mrf.mxu1 }
 0x177   : > { %1702 = vtanh.f32 %v990_v17  ;;  %v995_v28 = vmul.f32 0.5, %v963_v20  ;;  %v961_v31 = vadd.f32 %v2358_v36, %v840_v21  ;;  %v851_v34 = vadd.f32 %v1586_v27, %v1538_v22  ;;  %v633_v35 = vpop.f32.mrf.mxu0 }
 0x178   : > { %v842_v37 = vpop.f32.mrf.mxu1 }
 0x179   : > { %v964_v38 = vadd.f32 %v2358_v36, %v851_v34  ;;  %v843_v39 = vadd.f32 %v842_v37, %v633_v35  ;;  %v1541_v40 = vpop.f32.mrf.mxu0  ;;  %1704 = vtanh.f32 %v995_v28  ;;  %v993_v44 = vmul.f32 0.5, %v961_v31 }
 0x17a   : > { %v1589_v43 = vpop.f32.mrf.mxu1 }
 0x17b   : > { %v996_v47 = vmul.f32 0.5, %v964_v38  ;;  %v962_v54 = vadd.f32 %v2358_v36, %v843_v39  ;;  %v864_v55 = vadd.f32 %v1589_v43, %v1541_v40  ;;  %v646_v58 = vpop.f32.mrf.mxu0 }
 0x17c   : > { %v855_v59 = vpop.f32.mrf.mxu1 }
 0x17d   : > { %1706 = vtanh.f32 %v996_v47  ;;  %v994_v60 = vmul.f32 0.5, %v962_v54  ;;  %v967_v61 = vadd.f32 %v2358_v36, %v864_v55  ;;  %v856_v62 = vadd.f32 %v855_v59, %v646_v58  ;;  %v1542_v63 = vpop.f32.mrf.mxu0 }
 0x17e   : > { %v1697_v0 = vpop.eup %1696  ;;  %v1590_v3 = vpop.f32.mrf.mxu1  ;;  %1708 = vtanh.f32 %v993_v44 }
 0x17f   : > { %v999_v4 = vmul.f32 0.5, %v967_v61  ;;  %v965_v5 = vadd.f32 %v2358_v36, %v856_v62  ;;  %v867_v8 = vadd.f32 %v1590_v3, %v1542_v63  ;;  %1057 = vadd.xlane.f32.xlu1 %v1697_v0  ;;  %v649_v15 = vpop.f32.mrf.mxu0  ;;  %1710 = vtanh.f32 %v994_v60 }
 0x180   : > { %v1699_v16 = vpop.eup %1698  ;;  %v858_v17 = vpop.f32.mrf.mxu1 }
 0x181   : > { %v968_v20 = vadd.f32 %v2358_v36, %v867_v8  ;;  %v859_v21 = vadd.f32 %v858_v17, %v649_v15  ;;  %1053 = vadd.xlane.f32.xlu0 %v1699_v16  ;;  %v1545_v22 = vpop.f32.mrf.mxu0  ;;  %1712 = vtanh.f32 %v999_v4  ;;  %v997_v31 = vmul.f32 0.5, %v965_v5 }
 0x182   : > { %v1701_v27 = vpop.eup %1700  ;;  %v1593_v28 = vpop.f32.mrf.mxu1 }
 0x183   : > { %v1000_v34 = vmul.f32 0.5, %v968_v20  ;;  %v966_v35 = vadd.f32 %v2358_v36, %v859_v21  ;;  %v880_v37 = vadd.f32 %v1593_v28, %v1545_v22  ;;  %1059 = vadd.xlane.f32.xlu1 %v1701_v27  ;;  %v662_v38 = vpop.f32.mrf.mxu0 }
 0x184   : > { %v1703_v39 = vpop.eup %1702  ;;  %v871_v40 = vpop.f32.mrf.mxu1 }
 0x185   : > { %1714 = vtanh.f32 %v1000_v34  ;;  %v998_v43 = vmul.f32 0.5, %v966_v35  ;;  %v971_v44 = vadd.f32 %v2358_v36, %v880_v37  ;;  %v872_v47 = vadd.f32 %v871_v40, %v662_v38  ;;  %1055 = vadd.xlane.f32.xlu0 %v1703_v39  ;;  %v1546_v54 = vpop.f32.mrf.mxu0 }
 0x186   : > { %v1594_v55 = vpop.f32.mrf.mxu1  ;;  %v1705_v58 = vpop.eup %1704  ;;  %1716 = vtanh.f32 %v997_v31 }
 0x187   : > { %v1003_v59 = vmul.f32 0.5, %v971_v44  ;;  %v969_v60 = vadd.f32 %v2358_v36, %v872_v47  ;;  %v883_v61 = vadd.f32 %v1594_v55, %v1546_v54  ;;  %v665_v62 = vpop.f32.mrf.mxu0  ;;  %1718 = vtanh.f32 %v998_v43 }
 0x188   : > { %v874_v63 = vpop.f32.mrf.mxu1 }
 0x189   : > { %v972_v0 = vadd.f32 %v2358_v36, %v883_v61  ;;  %v875_v3 = vadd.f32 %v874_v63, %v665_v62  ;;  %1065 = vadd.xlane.f32.xlu0 %v1705_v58  ;;  %v1549_v4 = vpop.f32.mrf.mxu0  ;;  %1720 = vtanh.f32 %v1003_v59  ;;  %v1001_v15 = vmul.f32 0.5, %v969_v60 }
 0x18a   : > { %v1707_v5 = vpop.eup %1706  ;;  %v1597_v8 = vpop.f32.mrf.mxu1 }
 0x18b   : > { %v1004_v16 = vmul.f32 0.5, %v972_v0  ;;  %v970_v17 = vadd.f32 %v2358_v36, %v875_v3  ;;  %v896_v20 = vadd.f32 %v1597_v8, %v1549_v4  ;;  %1067 = vadd.xlane.f32.xlu1 %v1707_v5  ;;  %v678_v21 = vpop.f32.mrf.mxu0  ;;  %v1709_v22 = vpop.eup %1708 }
 0x18c   : > { %v887_v27 = vpop.f32.mrf.mxu1  ;;  %v1711_v37 = vpop.eup %1710 }
 0x18d   : > { %1722 = vtanh.f32 %v1004_v16  ;;  %v1002_v28 = vmul.f32 0.5, %v970_v17  ;;  %v975_v31 = vadd.f32 %v2358_v36, %v896_v20  ;;  %v888_v34 = vadd.f32 %v887_v27, %v678_v21  ;;  %1061 = vadd.xlane.f32.xlu0 %v1709_v22  ;;  %v1550_v35 = vpop.f32.mrf.mxu0 }
 0x18e   : > { %v1598_v38 = vpop.f32.mrf.mxu1  ;;  %v1713_v39 = vpop.eup %1712  ;;  %1724 = vtanh.f32 %v1001_v15 }
 0x18f   : > { %v1007_v40 = vmul.f32 0.5, %v975_v31  ;;  %v973_v43 = vadd.f32 %v2358_v36, %v888_v34  ;;  %v899_v44 = vadd.f32 %v1598_v38, %v1550_v35  ;;  %1063 = vadd.xlane.f32.xlu1 %v1711_v37  ;;  %v681_v47 = vpop.f32.mrf.mxu0  ;;  %1726 = vtanh.f32 %v1002_v28 }
 0x190   : > { %v890_v54 = vpop.f32.mrf.mxu1 }
 0x191   : > { %v976_v55 = vadd.f32 %v2358_v36, %v899_v44  ;;  %v891_v58 = vadd.f32 %v890_v54, %v681_v47  ;;  %1073 = vadd.xlane.f32.xlu0 %v1713_v39  ;;  %v1553_v59 = vpop.f32.mrf.mxu0  ;;  %1728 = vtanh.f32 %v1007_v40  ;;  %v1005_v62 = vmul.f32 0.5, %v973_v43 }
 0x192   : > { %v1715_v60 = vpop.eup %1714  ;;  %v1601_v61 = vpop.f32.mrf.mxu1 }
 0x193   : > { %v1008_v63 = vmul.f32 0.5, %v976_v55  ;;  %v974_v0 = vadd.f32 %v2358_v36, %v891_v58  ;;  %v912_v3 = vadd.f32 %v1601_v61, %v1553_v59  ;;  %1075 = vadd.xlane.f32.xlu1 %v1715_v60  ;;  %v694_v4 = vpop.f32.mrf.mxu0  ;;  %v1717_v5 = vpop.eup %1716 }
 0x194   : > { %v903_v8 = vpop.f32.mrf.mxu1  ;;  %v1719_v21 = vpop.eup %1718 }
 0x195   : > { %1730 = vtanh.f32 %v1008_v63  ;;  %v1006_v15 = vmul.f32 0.5, %v974_v0  ;;  %v979_v16 = vadd.f32 %v2358_v36, %v912_v3  ;;  %v904_v17 = vadd.f32 %v903_v8, %v694_v4  ;;  %1069 = vadd.xlane.f32.xlu0 %v1717_v5  ;;  %v1554_v20 = vpop.f32.mrf.mxu0 }
 0x196   : > { %v1602_v22 = vpop.f32.mrf.mxu1  ;;  %v1721_v27 = vpop.eup %1720  ;;  %1732 = vtanh.f32 %v1005_v62 }
 0x197   : > { %v1011_v28 = vmul.f32 0.5, %v979_v16  ;;  %v977_v31 = vadd.f32 %v2358_v36, %v904_v17  ;;  %v915_v34 = vadd.f32 %v1602_v22, %v1554_v20  ;;  %1071 = vadd.xlane.f32.xlu1 %v1719_v21  ;;  %v697_v35 = vpop.f32.mrf.mxu0  ;;  %1734 = vtanh.f32 %v1006_v15 }
 0x198   : > { %v906_v37 = vpop.f32.mrf.mxu1 }
 0x199   : > { %v980_v38 = vadd.f32 %v2358_v36, %v915_v34  ;;  %v907_v39 = vadd.f32 %v906_v37, %v697_v35  ;;  %1081 = vadd.xlane.f32.xlu0 %v1721_v27  ;;  %v1557_v40 = vpop.f32.mrf.mxu0  ;;  %1736 = vtanh.f32 %v1011_v28  ;;  %v1009_v47 = vmul.f32 0.5, %v977_v31 }
 0x19a   : > { %v1723_v43 = vpop.eup %1722  ;;  %v1605_v44 = vpop.f32.mrf.mxu1 }
 0x19b   : > { %v1012_v54 = vmul.f32 0.5, %v980_v38  ;;  %v978_v55 = vadd.f32 %v2358_v36, %v907_v39  ;;  %v928_v58 = vadd.f32 %v1605_v44, %v1557_v40  ;;  %1083 = vadd.xlane.f32.xlu1 %v1723_v43  ;;  %v710_v59 = vpop.f32.mrf.mxu0  ;;  %v1725_v60 = vpop.eup %1724 }
 0x19c   : > { %v919_v61 = vpop.f32.mrf.mxu1  ;;  %v1727_v4 = vpop.eup %1726 }
 0x19d   : > { %1738 = vtanh.f32 %v1012_v54  ;;  %v1010_v62 = vmul.f32 0.5, %v978_v55  ;;  %v983_v63 = vadd.f32 %v2358_v36, %v928_v58  ;;  %v920_v0 = vadd.f32 %v919_v61, %v710_v59  ;;  %1077 = vadd.xlane.f32.xlu0 %v1725_v60  ;;  %v1558_v3 = vpop.f32.mrf.mxu0 }
 0x19e   : > { %v1606_v5 = vpop.f32.mrf.mxu1  ;;  %v1729_v8 = vpop.eup %1728  ;;  %1740 = vtanh.f32 %v1009_v47 }
 0x19f   : > { %v1015_v15 = vmul.f32 0.5, %v983_v63  ;;  %v981_v16 = vadd.f32 %v2358_v36, %v920_v0  ;;  %v931_v17 = vadd.f32 %v1606_v5, %v1558_v3  ;;  %1079 = vadd.xlane.f32.xlu1 %v1727_v4  ;;  %v713_v20 = vpop.f32.mrf.mxu0  ;;  %1742 = vtanh.f32 %v1010_v62 }
 0x1a0   : > { %v922_v21 = vpop.f32.mrf.mxu1 }
 0x1a1   : > { %v984_v22 = vadd.f32 %v2358_v36, %v931_v17  ;;  %v923_v27 = vadd.f32 %v922_v21, %v713_v20  ;;  %1089 = vadd.xlane.f32.xlu0 %v1729_v8  ;;  %v1561_v28 = vpop.f32.mrf.mxu0  ;;  %1744 = vtanh.f32 %v1015_v15  ;;  %v1013_v35 = vmul.f32 0.5, %v981_v16 }
 0x1a2   : > { %v1731_v31 = vpop.eup %1730  ;;  %v1609_v34 = vpop.f32.mrf.mxu1 }
 0x1a3   : > { %v1016_v37 = vmul.f32 0.5, %v984_v22  ;;  %v982_v38 = vadd.f32 %v2358_v36, %v923_v27  ;;  %v944_v39 = vadd.f32 %v1609_v34, %v1561_v28  ;;  %1091 = vadd.xlane.f32.xlu1 %v1731_v31  ;;  %v726_v40 = vpop.f32.mrf.mxu0  ;;  %v1733_v43 = vpop.eup %1732 }
 0x1a4   : > { %v935_v44 = vpop.f32.mrf.mxu1  ;;  %v1735_v58 = vpop.eup %1734 }
 0x1a5   : > { %1746 = vtanh.f32 %v1016_v37  ;;  %v1014_v47 = vmul.f32 0.5, %v982_v38  ;;  %v936_v54 = vadd.f32 %v935_v44, %v726_v40  ;;  %1085 = vadd.xlane.f32.xlu0 %v1733_v43  ;;  %v1562_v55 = vpop.f32.mrf.mxu0  ;;  %v987_v59 = vadd.f32 %v2358_v36, %v944_v39 }
 0x1a6   : > { %v1610_v60 = vpop.f32.mrf.mxu1  ;;  %v1737_v61 = vpop.eup %1736  ;;  %1748 = vtanh.f32 %v1013_v35 }
 0x1a7   : > { %v985_v62 = vadd.f32 %v2358_v36, %v936_v54  ;;  %v947_v63 = vadd.f32 %v1610_v60, %v1562_v55  ;;  %1087 = vadd.xlane.f32.xlu1 %v1735_v58  ;;  %v729_v0 = vpop.f32.mrf.mxu0  ;;  %1750 = vtanh.f32 %v1014_v47  ;;  %v1019_v15 = vmul.f32 0.5, %v987_v59 }
 0x1a8   : > { %v938_v3 = vpop.f32.mrf.mxu1 }
 0x1a9   : > { %v1017_v4 = vmul.f32 0.5, %v985_v62  ;;  %v939_v5 = vadd.f32 %v938_v3, %v729_v0  ;;  %1097 = vadd.xlane.f32.xlu0 %v1737_v61  ;;  %v988_v16 = vadd.f32 %v2358_v36, %v947_v63 }
 0x1aa   : > { %v1739_v8 = vpop.eup %1738 }
 0x1ab   : > { %1752 = vtanh.f32 %v1017_v4  ;;  %v986_v17 = vadd.f32 %v2358_v36, %v939_v5  ;;  %1099 = vadd.xlane.f32.xlu1 %v1739_v8  ;;  %v1741_v20 = vpop.eup %1740  ;;  %v1020_v28 = vmul.f32 0.5, %v988_v16 }
 0x1ac   : > { %v1743_v22 = vpop.eup %1742  ;;  %1754 = vtanh.f32 %v1019_v15 }
 0x1ad   : > { %v1018_v21 = vmul.f32 0.5, %v986_v17  ;;  %1093 = vadd.xlane.f32.xlu0 %v1741_v20 }
 0x1ae   : > { %v1745_v27 = vpop.eup %1744 }
 0x1af   : > { %1756 = vtanh.f32 %v1018_v21  ;;  %1095 = vadd.xlane.f32.xlu1 %v1743_v22 }
 0x1b0   : > { %1758 = vtanh.f32 %v1020_v28 }
 0x1b1   : > { %1105 = vadd.xlane.f32.xlu0 %v1745_v27 }
 0x1b2   : > { %v1747_v31 = vpop.eup %1746 }
 0x1b3   : > { %1107 = vadd.xlane.f32.xlu1 %v1747_v31  ;;  %v1749_v34 = vpop.eup %1748 }
 0x1b4   : > { %v1751_v35 = vpop.eup %1750 }
 0x1b5   : > { %1101 = vadd.xlane.f32.xlu0 %v1749_v34 }
 0x1b7   : > { %1103 = vadd.xlane.f32.xlu1 %v1751_v35 }
 0x1b8   : > { %v1753_v37 = vpop.eup %1752 }
 0x1b9   : > { %1109 = vadd.xlane.f32.xlu0 %v1753_v37  ;;  %v1755_v36 = vpop.eup %1754 }
 0x1bc   : > { %v1757_v38 = vpop.eup %1756 }
 0x1bd   : > { %1111 = vadd.xlane.f32.xlu1 %v1757_v38  ;;  %1113 = vadd.xlane.f32.xlu0 %v1755_v36  ;;  %v1759_v39 = vpop.eup %1758 }
 0x1c1   : > { %1115 = vadd.xlane.f32.xlu1 %v1759_v39 }
 0x208   : > { %v1058_v40 = vpop.xlane.xlu1 %1057 }
 0x209   : > { %v1120_v43 = vmul.f32 0.0078125, %v1058_v40 }
 0x20a   : > { %v1054_v44 = vpop.xlane.xlu0 %1053 }
 0x20b   : > { %v1152_v47 = vmul.f32 0.5, %v1120_v43  ;;  %v1118_v54 = vmul.f32 0.0078125, %v1054_v44 }
 0x20c   : > { %v1060_v55 = vpop.xlane.xlu1 %1059 }
 0x20d   : > { %v1184_v58 = vadd.f32 0.5, %v1152_v47  ;;  %v1150_v59 = vmul.f32 0.5, %v1118_v54  ;;  %v1121_v60 = vmul.f32 0.0078125, %v1060_v55 }
 0x20e   : > { %v1056_v61 = vpop.xlane.xlu0 %1055 }
 0x20f   : > { %v1216_v62 = vmul.f32 %v1184_v58, %v2206_v25  ;;  %v1182_v63 = vadd.f32 0.5, %v1150_v59  ;;  %v1153_v0 = vmul.f32 0.5, %v1121_v60  ;;  %v1119_v3 = vmul.f32 0.0078125, %v1056_v61 }
 0x211   : > { %1248 = vst [vmem:[%s2394_s2 + $0x10] sm:$0xff] %v1216_v62  ;;  %v1214_v4 = vmul.f32 %v1182_v63, %v2196_v11  ;;  %v1185_v5 = vadd.f32 0.5, %v1153_v0  ;;  %v1151_v8 = vmul.f32 0.5, %v1119_v3 }
 0x212   : > { %v1066_v15 = vpop.xlane.xlu0 %1065 }
 0x213   : > { %1246 = vst [vmem:[%s2394_s2] sm:$0xff] %v1214_v4  ;;  %v1217_v16 = vmul.f32 %v1185_v5, %v2209_v26  ;;  %v1183_v17 = vadd.f32 0.5, %v1151_v8  ;;  %v1124_v25 = vmul.f32 0.0078125, %v1066_v15 }
 0x214   : > { %v1068_v20 = vpop.xlane.xlu1 %1067 }
 0x215   : > { %1249 = vst [vmem:[%s2394_s2 + $0x18] sm:$0xff] %v1217_v16  ;;  %v1215_v21 = vmul.f32 %v1183_v17, %v2199_v12  ;;  %v1156_v22 = vmul.f32 0.5, %v1124_v25  ;;  %v1125_v27 = vmul.f32 0.0078125, %v1068_v20 }
 0x216   : > { %v1062_v28 = vpop.xlane.xlu0 %1061 }
 0x217   : > { %1247 = vst [vmem:[%s2394_s2 + $0x8] sm:$0xff] %v1215_v21  ;;  %v1188_v31 = vadd.f32 0.5, %v1156_v22  ;;  %v1157_v11 = vmul.f32 0.5, %v1125_v27  ;;  %v1122_v34 = vmul.f32 0.0078125, %v1062_v28 }
 0x218   : > { %v1064_v35 = vpop.xlane.xlu1 %1063 }
 0x219   : > { %v1220_v37 = vmul.f32 %v1188_v31, %v2226_v45  ;;  %v1189_v36 = vadd.f32 0.5, %v1157_v11  ;;  %v1154_v26 = vmul.f32 0.5, %v1122_v34  ;;  %v1123_v38 = vmul.f32 0.0078125, %v1064_v35 }
 0x21a   : > { %v1074_v39 = vpop.xlane.xlu0 %1073 }
 0x21b   : > { %1252 = vst [vmem:[%s2394_s2 + $0x30] sm:$0xff] %v1220_v37  ;;  %v1221_v40 = vmul.f32 %v1189_v36, %v2229_v46  ;;  %v1186_v12 = vadd.f32 0.5, %v1154_v26  ;;  %v1155_v43 = vmul.f32 0.5, %v1123_v38  ;;  %v1128_v44 = vmul.f32 0.0078125, %v1074_v39 }
 0x21c   : > { %v1076_v47 = vpop.xlane.xlu1 %1075 }
 0x21d   : > { %1253 = vst [vmem:[%s2394_s2 + $0x38] sm:$0xff] %v1221_v40  ;;  %v1218_v54 = vmul.f32 %v1186_v12, %v2214_v29  ;;  %v1187_v55 = vadd.f32 0.5, %v1155_v43  ;;  %v1160_v58 = vmul.f32 0.5, %v1128_v44  ;;  %v1129_v45 = vmul.f32 0.0078125, %v1076_v47 }
 0x21e   : > { %v1070_v59 = vpop.xlane.xlu0 %1069 }
 0x21f   : > { %1250 = vst [vmem:[%s2394_s2 + $0x20] sm:$0xff] %v1218_v54  ;;  %v1219_v60 = vmul.f32 %v1187_v55, %v2217_v30  ;;  %v1192_v61 = vadd.f32 0.5, %v1160_v58  ;;  %v1161_v62 = vmul.f32 0.5, %v1129_v45  ;;  %v1126_v46 = vmul.f32 0.0078125, %v1070_v59 }
 0x220   : > { %v1072_v63 = vpop.xlane.xlu1 %1071 }
 0x221   : > { %1251 = vst [vmem:[%s2394_s2 + $0x28] sm:$0xff] %v1219_v60  ;;  %v1224_v0 = vmul.f32 %v1192_v61, %v2246_v1  ;;  %v1193_v3 = vadd.f32 0.5, %v1161_v62  ;;  %v1158_v4 = vmul.f32 0.5, %v1126_v46  ;;  %v1127_v29 = vmul.f32 0.0078125, %v1072_v63 }
 0x222   : > { %v1082_v5 = vpop.xlane.xlu0 %1081 }
 0x223   : > { %1256 = vst [vmem:[%s2394_s2 + $0x50] sm:$0xff] %v1224_v0  ;;  %v1225_v8 = vmul.f32 %v1193_v3, %v2249_v2  ;;  %v1190_v15 = vadd.f32 0.5, %v1158_v4  ;;  %v1159_v16 = vmul.f32 0.5, %v1127_v29  ;;  %v1132_v30 = vmul.f32 0.0078125, %v1082_v5 }
 0x224   : > { %v1084_v17 = vpop.xlane.xlu1 %1083 }
 0x225   : > { %1257 = vst [vmem:[%s2394_s2 + $0x58] sm:$0xff] %v1225_v8  ;;  %v1222_v25 = vmul.f32 %v1190_v15, %v2234_v50  ;;  %v1191_v20 = vadd.f32 0.5, %v1159_v16  ;;  %v1164_v21 = vmul.f32 0.5, %v1132_v30  ;;  %v1133_v1 = vmul.f32 0.0078125, %v1084_v17 }
 0x226   : > { %v1078_v22 = vpop.xlane.xlu0 %1077 }
 0x227   : > { %1254 = vst [vmem:[%s2394_s2 + $0x40] sm:$0xff] %v1222_v25  ;;  %v1223_v27 = vmul.f32 %v1191_v20, %v2237_v51  ;;  %v1196_v28 = vadd.f32 0.5, %v1164_v21  ;;  %v1165_v31 = vmul.f32 0.5, %v1133_v1  ;;  %v1130_v2 = vmul.f32 0.0078125, %v1078_v22 }
 0x228   : > { %v1080_v11 = vpop.xlane.xlu1 %1079 }
 0x229   : > { %1255 = vst [vmem:[%s2394_s2 + $0x48] sm:$0xff] %v1223_v27  ;;  %v1228_v34 = vmul.f32 %v1196_v28, %v2266_v23  ;;  %v1197_v35 = vadd.f32 0.5, %v1165_v31  ;;  %v1162_v37 = vmul.f32 0.5, %v1130_v2  ;;  %v1131_v50 = vmul.f32 0.0078125, %v1080_v11 }
 0x22a   : > { %v1090_v36 = vpop.xlane.xlu0 %1089 }
 0x22b   : > { %1260 = vst [vmem:[%s2394_s2 + $0x70] sm:$0xff] %v1228_v34  ;;  %v1229_v26 = vmul.f32 %v1197_v35, %v2269_v24  ;;  %v1194_v38 = vadd.f32 0.5, %v1162_v37  ;;  %v1163_v39 = vmul.f32 0.5, %v1131_v50  ;;  %v1136_v51 = vmul.f32 0.0078125, %v1090_v36 }
 0x22c   : > { %v1092_v40 = vpop.xlane.xlu1 %1091 }
 0x22d   : > { %1261 = vst [vmem:[%s2394_s2 + $0x78] sm:$0xff] %v1229_v26  ;;  %v1226_v12 = vmul.f32 %v1194_v38, %v2254_v6  ;;  %v1195_v43 = vadd.f32 0.5, %v1163_v39  ;;  %v1168_v44 = vmul.f32 0.5, %v1136_v51  ;;  %v1137_v23 = vmul.f32 0.0078125, %v1092_v40 }
 0x22e   : > { %v1086_v47 = vpop.xlane.xlu0 %1085 }
 0x22f   : > { %1258 = vst [vmem:[%s2394_s2 + $0x60] sm:$0xff] %v1226_v12  ;;  %v1227_v54 = vmul.f32 %v1195_v43, %v2257_v7  ;;  %v1200_v55 = vadd.f32 0.5, %v1168_v44  ;;  %v1169_v58 = vmul.f32 0.5, %v1137_v23  ;;  %v1134_v24 = vmul.f32 0.0078125, %v1086_v47 }
 0x230   : > { %v1088_v45 = vpop.xlane.xlu1 %1087 }
 0x231   : > { %1259 = vst [vmem:[%s2394_s2 + $0x68] sm:$0xff] %v1227_v54  ;;  %v1232_v59 = vmul.f32 %v1200_v55, %v2286_v49  ;;  %v1201_v60 = vadd.f32 0.5, %v1169_v58  ;;  %v1166_v61 = vmul.f32 0.5, %v1134_v24  ;;  %v1135_v6 = vmul.f32 0.0078125, %v1088_v45 }
 0x232   : > { %v1098_v62 = vpop.xlane.xlu0 %1097 }
 0x233   : > { %1264 = vst [vmem:[%s2394_s2 + $0x90] sm:$0xff] %v1232_v59  ;;  %v1233_v46 = vmul.f32 %v1201_v60, %v2289_v52  ;;  %v1198_v63 = vadd.f32 0.5, %v1166_v61  ;;  %v1167_v0 = vmul.f32 0.5, %v1135_v6  ;;  %v1140_v7 = vmul.f32 0.0078125, %v1098_v62 }
 0x234   : > { %v1100_v3 = vpop.xlane.xlu1 %1099 }
 0x235   : > { %1265 = vst [vmem:[%s2394_s2 + $0x98] sm:$0xff] %v1233_v46  ;;  %v1230_v4 = vmul.f32 %v1198_v63, %v2274_v32  ;;  %v1199_v29 = vadd.f32 0.5, %v1167_v0  ;;  %v1172_v5 = vmul.f32 0.5, %v1140_v7  ;;  %v1141_v49 = vmul.f32 0.0078125, %v1100_v3 }
 0x236   : > { %v1094_v8 = vpop.xlane.xlu0 %1093 }
 0x237   : > { %1262 = vst [vmem:[%s2394_s2 + $0x80] sm:$0xff] %v1230_v4  ;;  %v1231_v15 = vmul.f32 %v1199_v29, %v2277_v33  ;;  %v1204_v16 = vadd.f32 0.5, %v1172_v5  ;;  %v1173_v30 = vmul.f32 0.5, %v1141_v49  ;;  %v1138_v52 = vmul.f32 0.0078125, %v1094_v8 }
 0x238   : > { %v1096_v17 = vpop.xlane.xlu1 %1095 }
 0x239   : > { %1263 = vst [vmem:[%s2394_s2 + $0x88] sm:$0xff] %v1231_v15  ;;  %v1236_v25 = vmul.f32 %v1204_v16, %v2306_v13  ;;  %v1205_v20 = vadd.f32 0.5, %v1173_v30  ;;  %v1170_v21 = vmul.f32 0.5, %v1138_v52  ;;  %v1139_v32 = vmul.f32 0.0078125, %v1096_v17 }
 0x23a   : > { %v1106_v1 = vpop.xlane.xlu0 %1105 }
 0x23b   : > { %1268 = vst [vmem:[%s2394_s2 + $0xb0] sm:$0xff] %v1236_v25  ;;  %v1237_v22 = vmul.f32 %v1205_v20, %v2309_v14  ;;  %v1202_v27 = vadd.f32 0.5, %v1170_v21  ;;  %v1171_v28 = vmul.f32 0.5, %v1139_v32  ;;  %v1144_v33 = vmul.f32 0.0078125, %v1106_v1 }
 0x23c   : > { %v1108_v31 = vpop.xlane.xlu1 %1107 }
 0x23d   : > { %1269 = vst [vmem:[%s2394_s2 + $0xb8] sm:$0xff] %v1237_v22  ;;  %v1234_v2 = vmul.f32 %v1202_v27, %v2294_v56  ;;  %v1203_v11 = vadd.f32 0.5, %v1171_v28  ;;  %v1176_v34 = vmul.f32 0.5, %v1144_v33  ;;  %v1145_v13 = vmul.f32 0.0078125, %v1108_v31 }
 0x23e   : > { %v1102_v35 = vpop.xlane.xlu0 %1101 }
 0x23f   : > { %1266 = vst [vmem:[%s2394_s2 + $0xa0] sm:$0xff] %v1234_v2  ;;  %v1235_v37 = vmul.f32 %v1203_v11, %v2297_v57  ;;  %v1208_v50 = vadd.f32 0.5, %v1176_v34  ;;  %v1177_v36 = vmul.f32 0.5, %v1145_v13  ;;  %v1142_v14 = vmul.f32 0.0078125, %v1102_v35 }
 0x240   : > { %v1104_v26 = vpop.xlane.xlu1 %1103 }
 0x241   : > { %1267 = vst [vmem:[%s2394_s2 + $0xa8] sm:$0xff] %v1235_v37  ;;  %v1240_v38 = vmul.f32 %v1208_v50, %v2326_v41  ;;  %v1209_v39 = vadd.f32 0.5, %v1177_v36  ;;  %v1174_v51 = vmul.f32 0.5, %v1142_v14  ;;  %v1143_v56 = vmul.f32 0.0078125, %v1104_v26 }
 0x242   : > { %v1110_v40 = vpop.xlane.xlu0 %1109 }
 0x243   : > { %1272 = vst [vmem:[%s2394_s2 + $0xd0] sm:$0xff] %v1240_v38  ;;  %v1241_v12 = vmul.f32 %v1209_v39, %v2329_v42  ;;  %v1206_v43 = vadd.f32 0.5, %v1174_v51  ;;  %v1175_v44 = vmul.f32 0.5, %v1143_v56  ;;  %v1146_v57 = vmul.f32 0.0078125, %v1110_v40 }
 0x245   : > { %1273 = vst [vmem:[%s2394_s2 + $0xd8] sm:$0xff] %v1241_v12  ;;  %v1238_v23 = vmul.f32 %v1206_v43, %v2314_v18  ;;  %v1207_v47 = vadd.f32 0.5, %v1175_v44  ;;  %v1178_v54 = vmul.f32 0.5, %v1146_v57 }
 0x246   : > { %v1112_v55 = vpop.xlane.xlu1 %1111  ;;  %v1114_v41 = vpop.xlane.xlu0 %1113 }
 0x247   : > { %1270 = vst [vmem:[%s2394_s2 + $0xc0] sm:$0xff] %v1238_v23  ;;  %v1239_v58 = vmul.f32 %v1207_v47, %v2317_v19  ;;  %v1210_v24 = vadd.f32 0.5, %v1178_v54  ;;  %v1147_v45 = vmul.f32 0.0078125, %v1112_v55  ;;  %v1148_v59 = vmul.f32 0.0078125, %v1114_v41 }
 0x249   : > { %1271 = vst [vmem:[%s2394_s2 + $0xc8] sm:$0xff] %v1239_v58  ;;  %v1242_v42 = vmul.f32 %v1210_v24, %v2334_v48  ;;  %v1179_v60 = vmul.f32 0.5, %v1147_v45  ;;  %v1180_v61 = vmul.f32 0.5, %v1148_v59 }
 0x24a   : > { %v1116_v18 = vpop.xlane.xlu1 %1115 }
 0x24b   : > { %1274 = vst [vmem:[%s2394_s2 + $0xe0] sm:$0xff] %v1242_v42  ;;  %v1211_v6 = vadd.f32 0.5, %v1179_v60  ;;  %v1212_v62 = vadd.f32 0.5, %v1180_v61  ;;  %v1149_v46 = vmul.f32 0.0078125, %v1116_v18 }
 0x24d   : > { %v1243_v63 = vmul.f32 %v1211_v6, %v2337_v53  ;;  %v1244_v19 = vmul.f32 %v1212_v62, %v2346_v9  ;;  %v1181_v0 = vmul.f32 0.5, %v1149_v46 }
 0x24f   : > { %1275 = vst [vmem:[%s2394_s2 + $0xe8] sm:$0xff] %v1243_v63  ;;  %1276 = vst [vmem:[%s2394_s2 + $0xf0] sm:$0xff] %v1244_v19  ;;  %v1213_v7 = vadd.f32 0.5, %v1181_v0  ;;  %1285 = sbr.rel (!%p2541_p12) target bundleno = 623 (0x26f), region = 60 }
 0x251   : > { %v1245_v3 = vmul.f32 %v1213_v7, %v2349_v10 }
 0x253   : > { %1277 = vst [vmem:[%s2394_s2 + $0xf8] sm:$0xff] %v1245_v3 }
 0x254   : > { %s2552_s16 = smov (!%p1288_p8, %s1287_s16), 32 }
 0x255   : > { %s2463_s28 = sshll.u32 %s2552_s16, 7 }
 0x256   : > { %s1292_s17 = ssub.s32 4096, %s2463_s28 }
 0x257   : > { %1293 = vsyncadd %s1279_s12, %s1292_s17  ;;  %p1458_p4 = scmp.ne.s32.totalorder %s2463_s28, 0  ;;  %s1466_s30 = sshll.u32 %s2006_s22, 12 }
 0x258   : > { %s2473_s11 = scalar_lea.hbm %s2525_s5, %s1466_s30  ;;  %s1298_s13 = sshll.u32 %s2394_s2, 4  ;;  %s2476_s13 = int_to_ptr.vmem [resolvable:$true] %s1298_s13 }
 0x259   : > { %s1864_s10 = scalar_lea.vmem %s2476_s13, %s2463_s28  ;;  %s1952_s7 = smov [#allocation10]  }
 0x25a   : > { %p1865_p11 = scmp.ne.s32.totalorder %s2476_s13, %s1864_s10  ;;  %s1868_s14 = sshll.u32 %s1952_s7, 4  ;;  %s1869_s14 = int_to_ptr.vmem [resolvable:$false] %s1868_s14 }
 0x25b   : > { %s1870_s22 = scalar_lea.vmem %s1869_s14, 8192  ;;  %p1871_p0 = scmp.lt.s32.totalorder %s2476_s13, %s1869_s14 }
 0x25c   : > { %p1866_p2 = pnand %p1865_p11, %p1458_p4  ;;  %p1872_p6 = scmp.lt.s32.totalorder %s1870_s22, %s1864_s10 }
 0x25e   : > { %p1867_p10 = pneg %p1866_p2  ;;  %p1873_p1 = por %p1872_p6, %p1871_p0 }
 0x260   : > { %p1874_p3 = pnand %p1873_p1, %p1867_p10 }
 0x262   : > { %1877 = shalt.err (!%p1874_p3)
}
 0x263   : > { %s1878_s23 = scalar_lea.hbm %s2473_s11, %s2463_s28  ;;  %s1882_s2 = scalar_lea.hbm %s2525_s5, 9600 }
 0x264   : > { %p1879_p13 = scmp.ne.s32.totalorder %s2473_s11, %s1878_s23  ;;  %p1883_p9 = scmp.lt.s32.totalorder %s2473_s11, %s2525_s5 }
 0x265   : > { %p1884_p12 = scmp.lt.s32.totalorder %s1882_s2, %s1878_s23 }
 0x266   : > { %p1880_p5 = pnand %p1879_p13, %p1458_p4 }
 0x267   : > { %p1885_p8 = por %p1884_p12, %p1883_p9 }
 0x268   : > { %p1881_p7 = pneg %p1880_p5 }
 0x26a   : > { %p1886_p11 = pnand %p1885_p8, %p1881_p7 }
 0x26c   : > { %1889 = shalt.err (!%p1886_p11)
}
 0x26d   : > { %s1953_s17 = smov 128   ;;  %s1954_s30 = smov 8  }
 0x26e   : > { %1304 = dma.vmem_to_hbm [thread:$0]  (%p1458_p4), %s2476_s13, %s2463_s28, %s2473_s11, %s1279_s12, %s1953_s17, %s1953_s17, %s1954_s30  }
 0x26f PF: > { %p1637_p2 = scmp.ge.s32.totalorder %s1940_s21, 2  ;;  %s1313_s25 = sand.u32 1, %s1928_s18  }
 0x270   : > { %p2542_p10 = scmp.ne.s32.totalorder %s2532_s6, 0  ;;  %s1314_s8 = scalar_lea.sflag [#allocation4], %s1313_s25 }
 0x272   : > { %p1630_p0 = pnand %p1637_p2, %p2542_p10 }
 0x274   : > { %p1631_p6 = pneg %p1630_p0 }
 0x276   : > { %1923 = dma.done.wait (%p1631_p6), %s1314_s8, 4096  }
 0x277   : > { %1925 = vsyncadd (%p1631_p6), %s1314_s8, 4294963200  ;;  %p22_p1 = scmp.ge.s32.totalorder %s2010_s24, 5   ;;  %s2543_s18 = smov %s1932_s19 }
 0x278   : > { %s2544_s19 = smov %s1936_s20  ;;  %s2545_s20 = smov %s2022_s27 }
 0x279   : > { %s2546_s21 = smov %s2010_s24  ;;  %24 = sbr.rel (!%p22_p1) target bundleno = 10 (0xa), region = 106 }
 0x27e   :  { %1319 = vsyncpa [#allocation3], 1 }
 0x27f   :  { %1321 = vsyncpa [#allocation3 + $0x1], 1 }
 0x280   :  { %1322 = vsyncpa [#allocation6], 1 }
 0x281   :  { %1324 = vsyncpa [#allocation6 + $0x1], 1 }
 0x282   :  { %1325 = vsyncpa [#allocation9], 1 }
 0x283   :  { %1326 = vsyncpa [#allocation4], 1 }
 0x284   :  { %1328 = vsyncpa [#allocation4 + $0x1], 1 }

// kernel: tpu_custom_call.1
= control target key start
LH: loop header
LB: loop body
LE: loop exit
PB: predicated region body
PF: predicated region fallthrough
CT: control target
= control target key end

     0   :  { %s2520_s0 = inlined_call_operand.hbm [shape: f32[600,128], index: 0, kind: input, shape index: {}]   ;;  %s2521_s1 = inlined_call_operand.hbm [shape: f32[600,128], index: 1, kind: input, shape index: {}]   ;;  %s2522_s2 = inlined_call_operand.hbm [shape: bf16[128,128], index: 2, kind: input, shape index: {}]   ;;  %s2523_s3 = inlined_call_operand.hbm [shape: bf16[128,128], index: 3, kind: input, shape index: {}]   ;;  %s2524_s4 = inlined_call_operand.vmem [shape: f32[1,128], index: 4, kind: input, shape index: {}]   ;;  %s2525_s5 = inlined_call_operand.hbm [shape: f32[600,128], index: 5, kind: output, shape index: {}]  }
   0x1   :  { %2528 = sst [smem:[#allocation16_spill]] %s2522_s2 }
   0x2   :  { %10 = vsyncpa [#allocation3], 0 }
   0x3   :  { %12 = vsyncpa [#allocation3 + $0x1], 0 }
   0x4   :  { %13 = vsyncpa [#allocation6], 0 }
   0x5   :  { %15 = vsyncpa [#allocation6 + $0x1], 0 }
   0x6   :  { %16 = vsyncpa [#allocation9], 0 }
   0x7   :  { %17 = vsyncpa [#allocation4], 0 }
   0x8   :  { %19 = vsyncpa [#allocation4 + $0x1], 0  ;;  %s1985_s18 = smov 0   ;;  %s1987_s19 = smov 0  }
   0x9   :  { %s1989_s20 = smov 0   ;;  %s1991_s21 = smov 0  }
   0xa LB: > { %s2006_s22 = sadd.s32 4294967295, %s1940_s21   ;;  %s1413_s23 = sadd.s32 4294967294, %s1940_s21   ;;  %s1940_s21 = sphi %s1991_s21, %s2546_s21   ;;  %s1936_s20 = sphi %s1989_s20, %s2545_s20   ;;  %s1932_s19 = sphi %s1987_s19, %s2544_s19   ;;  %s1928_s18 = sphi %s1985_s18, %s2543_s18  }
   0xb   : > { %s2010_s24 = sadd.s32 1, %s1940_s21   ;;  %s32_s25 = sadd.s32 1, %s1936_s20 }
   0xc   : > { %s29_s26 = ssub.s32 %s1940_s21, %s2010_s24  ;;  %p39_p0 = scmp.ne.s32.totalorder %s1936_s20, %s1932_s19 }
   0xd   : > { %p30_p1 = scmp.eq.s32.totalorder %s29_s26, 0  ;;  %p40_p2 = scmp.eq.s32.totalorder %s1940_s21, 0 }
   0xe   : > { %p45_p3 = scmp.ne.s32.totalorder %s1932_s19, %s1928_s18  ;;  %p2526_p4 = scmp.eq.s32.totalorder %s2006_s22, 0 }
   0xf   : > { %s2022_s27 = scalar_select %p30_p1, %s1936_s20, %s32_s25  }
  0x10   : > { %p2024_p5 = por %p40_p2, %p39_p0  ;;  %p2030_p6 = por %p2526_p4, %p45_p3 }
  0x11   : > { %p158_p7 = scmp.eq.s32.totalorder %s2006_s22, 2  ;;  %p164_p8 = scmp.eq.s32.totalorder %s1413_s23, 2 }
  0x12   : > { %s2530_s29 = scalar_select %p2030_p6, 1, 0 }
  0x13   : > { %p1414_p9 = scmp.ge.s32.totalorder %s1940_s21, 1  ;;  %p171_p10 = scmp.lt.s32.totalorder %s1940_s21, 4 }
  0x14   : > { %p2037_p11 = por %p158_p7, %p39_p0  ;;  %p2041_p12 = por %p164_p8, %p45_p3 }
  0x15   : > { %p2045_p13 = pnand %p1414_p9, %p171_p10  ;;  %s1942_s8 = smov [#allocation7]  }
  0x16   : > { %s2531_s30 = scalar_select %p2037_p11, 1, 0 }
  0x17   : > { %s2532_s6 = scalar_select %p2041_p12, 1, 0 }
  0x18   : > { %p1622_p1 = pneg %p2045_p13  ;;  %s183_s9 = sshll.u32 %s1942_s8, 4  ;;  %s184_s9 = int_to_ptr.vmem [resolvable:$true] %s183_s9 }
  0x19   : > { %s1943_s11 = smov [#allocation8]   ;;  %s1771_s13 = scalar_lea.vmem %s184_s9, 1024 }
  0x1a   : > { %p2053_p2 = pnand %p1622_p1, %p2526_p4  ;;  %s196_s12 = sshll.u32 %s1943_s11, 4  ;;  %s197_s12 = int_to_ptr.vmem [resolvable:$true] %s196_s12 }
  0x1b   : > { %p1772_p3 = scmp.ne.s32.totalorder %s184_s9, %s1771_s13  ;;  %p1779_p9 = scmp.lt.s32.totalorder %s184_s9, %s184_s9 }
  0x1c   : > { %p1762_p0 = pneg %p2053_p2  ;;  %p1780_p10 = scmp.lt.s32.totalorder %s1771_s13, %s1771_s13 }
  0x1e   : > { %p1774_p7 = pnand %p1772_p3, %p1762_p0  ;;  %p1781_p12 = por %p1780_p10, %p1779_p9 }
  0x20   : > { %p1775_p8 = pneg %p1774_p7 }
  0x22   : > { %p1782_p1 = pnand %p1781_p12, %p1775_p8 }
  0x24   : > { %1785 = shalt.err (!%p1782_p1)
}
  0x25   : > { %s1944_s14 = smov 64   ;;  %s1945_s15 = smov 4  }
  0x26   : > { %s2535_s2 = sld [smem:[#allocation16_spill]]  ;;  %s1797_s23 = scalar_lea.vmem %s197_s12, 1024 }
  0x27   : > { %p1798_p4 = scmp.ne.s32.totalorder %s197_s12, %s1797_s23  ;;  %p1805_p11 = scmp.lt.s32.totalorder %s197_s12, %s197_s12 }
  0x28   : > { %p1806_p6 = scmp.lt.s32.totalorder %s1797_s23, %s1797_s23 }
  0x29   : > { %p1800_p3 = pnand %p1798_p4, %p1762_p0 }
  0x2a   : > { %p1807_p9 = por %p1806_p6, %p1805_p11 }
  0x2b   : > { %p1801_p7 = pneg %p1800_p3 }
  0x2c   : > { %1625 = dma.hbm_to_vmem [thread:$0]  (!%p2053_p2), %s2535_s2, 1024, %s184_s9, [#allocation6], %s1944_s14, %s1944_s14, %s1945_s15  }
  0x2d   : > { %p1808_p12 = pnand %p1807_p9, %p1801_p7 }
  0x2f   : > { %1811 = shalt.err (!%p1808_p12)
}
  0x30   : > { %1628 = dma.hbm_to_vmem [thread:$0]  (!%p2053_p2), %s2523_s3, 1024, %s197_s12, [#allocation9], %s1944_s14, %s1944_s14, %s1945_s15  }
  0x31   : > { %p1417_p8 = scmp.ge.s32.totalorder %s1940_s21, 3 }
  0x33   : > { %209 = sbr.rel (%p1417_p8) target bundleno = 120 (0x78), region = 28 }
  0x38   : > { %212 = sbr.rel (!%p2024_p5) target bundleno = 88 (0x58), region = 32  ;;  %s213_s8 = sand.u32 (%p2024_p5), 1, %s1936_s20  }
  0x39   : > { %s1419_s9 = sshll.u32 (%p2024_p5), %s1940_s21, 5  ;;  %s1418_s11 = sshll.u32 (%p2024_p5), %s213_s8, 8 }
  0x3a   : > { %s219_s13 = ssub.s32 (%p2024_p5), 75, %s1419_s9  ;;  %s2083_s17 = scalar_lea.sflag (%p2024_p5), [#allocation3], %s213_s8 }
  0x3b   : > { %p220_p4 = scmp.lt.s32.totalorder (%p2024_p5), %s219_s13, 32  ;;  %s217_s12 = scalar_lea.vmem (%p2024_p5), [#allocation2], %s1418_s11 }
  0x3d   : > { %s2548_s13 = smov (!%p220_p4, %s219_s13), 32 }
  0x3e   : > { %s2080_s16 = sshll.u32 %s2548_s13, 7 }
  0x3f   : > { %s224_s10 = ssub.s32 4096, %s2080_s16 }
  0x40   : > { %225 = vsyncadd %s2083_s17, %s224_s10  ;;  %p1421_p6 = scmp.ne.s32.totalorder %s2080_s16, 0  ;;  %s1464_s14 = sshll.u32 %s1940_s21, 12 }
  0x41   : > { %s2091_s25 = scalar_lea.hbm %s2520_s0, %s1464_s14  ;;  %s230_s26 = sshll.u32 %s217_s12, 4  ;;  %s2093_s26 = int_to_ptr.vmem [resolvable:$true] %s230_s26 }
  0x42   : > { %s1812_s8 = scalar_lea.hbm %s2091_s25, %s2080_s16  ;;  %s1816_s13 = scalar_lea.hbm %s2520_s0, 9600 }
  0x43   : > { %p1813_p11 = scmp.ne.s32.totalorder %s2091_s25, %s1812_s8  ;;  %p1817_p10 = scmp.lt.s32.totalorder %s2091_s25, %s2520_s0 }
  0x44   : > { %p1818_p1 = scmp.lt.s32.totalorder %s1816_s13, %s1812_s8 }
  0x45   : > { %p1814_p2 = pnand %p1813_p11, %p1421_p6 }
  0x46   : > { %p1819_p3 = por %p1818_p1, %p1817_p10 }
  0x47   : > { %p1815_p0 = pneg %p1814_p2 }
  0x49   : > { %p1820_p7 = pnand %p1819_p3, %p1815_p0 }
  0x4b   : > { %1823 = shalt.err (!%p1820_p7)
}
  0x4c   : > { %s1824_s12 = scalar_lea.vmem %s2093_s26, %s2080_s16  ;;  %s1946_s14 = smov [#allocation2]  }
  0x4d   : > { %p1825_p9 = scmp.ne.s32.totalorder %s2093_s26, %s1824_s12  ;;  %s1828_s15 = sshll.u32 %s1946_s14, 4  ;;  %s1829_s15 = int_to_ptr.vmem [resolvable:$false] %s1828_s15 }
  0x4e   : > { %s1830_s23 = scalar_lea.vmem %s1829_s15, 8192  ;;  %p1831_p4 = scmp.lt.s32.totalorder %s2093_s26, %s1829_s15 }
  0x4f   : > { %p1826_p12 = pnand %p1825_p9, %p1421_p6  ;;  %p1832_p11 = scmp.lt.s32.totalorder %s1830_s23, %s1824_s12 }
  0x51   : > { %p1827_p8 = pneg %p1826_p12  ;;  %p1833_p2 = por %p1832_p11, %p1831_p4 }
  0x53   : > { %p1834_p10 = pnand %p1833_p2, %p1827_p8 }
  0x55   : > { %1837 = shalt.err (!%p1834_p10)
}
  0x56   : > { %s1947_s2 = smov 128   ;;  %s1948_s8 = smov 8  }
  0x57   : > { %236 = dma.hbm_to_vmem [thread:$0]  (%p1421_p6), %s2091_s25, %s2080_s16, %s2093_s26, %s2083_s17, %s1947_s2, %s1947_s2, %s1948_s8  }
  0x58 PF: > { %239 = sbr.rel (!%p2024_p5) target bundleno = 120 (0x78), region = 36  ;;  %s240_s9 = sand.u32 (%p2024_p5), 1, %s1940_s21  }
  0x59   : > { %s242_s11 = sand.u32 (%p2024_p5), 1, %s1936_s20   ;;  %s1426_s10 = sshll.u32 (%p2024_p5), %s1940_s21, 5 }
  0x5a   : > { %s1425_s13 = sshll.u32 (%p2024_p5), %s242_s11, 8  ;;  %s246_s12 = ssub.s32 (%p2024_p5), 75, %s1426_s10 }
  0x5b   : > { %p247_p0 = scmp.lt.s32.totalorder (%p2024_p5), %s246_s12, 32  ;;  %s2127_s23 = scalar_lea.sflag (%p2024_p5), [#allocation6], %s240_s9 }
  0x5c   : > { %s244_s16 = scalar_lea.vmem (%p2024_p5), [#allocation5], %s1425_s13 }
  0x5d   : > { %s2550_s12 = smov (!%p247_p0, %s246_s12), 32 }
  0x5e   : > { %s2124_s14 = sshll.u32 %s2550_s12, 7 }
  0x5f   : > { %s251_s15 = ssub.s32 4096, %s2124_s14 }
  0x60   : > { %252 = vsyncadd %s2127_s23, %s251_s15  ;;  %p1428_p5 = scmp.ne.s32.totalorder %s2124_s14, 0  ;;  %s1465_s28 = sshll.u32 %s1940_s21, 12 }
  0x61   : > { %s2135_s26 = scalar_lea.hbm %s2521_s1, %s1465_s28  ;;  %s257_s2 = sshll.u32 %s244_s16, 4  ;;  %s2137_s2 = int_to_ptr.vmem [resolvable:$true] %s257_s2 }
  0x62   : > { %s1838_s8 = scalar_lea.hbm %s2135_s26, %s2124_s14  ;;  %s1842_s13 = scalar_lea.hbm %s2521_s1, 9600 }
  0x63   : > { %p1839_p6 = scmp.ne.s32.totalorder %s2135_s26, %s1838_s8  ;;  %p1843_p7 = scmp.lt.s32.totalorder %s2135_s26, %s2521_s1 }
  0x64   : > { %p1844_p9 = scmp.lt.s32.totalorder %s1842_s13, %s1838_s8 }
  0x65   : > { %p1840_p1 = pnand %p1839_p6, %p1428_p5 }
  0x66   : > { %p1845_p12 = por %p1844_p9, %p1843_p7 }
  0x67   : > { %p1841_p3 = pneg %p1840_p1 }
  0x69   : > { %p1846_p8 = pnand %p1845_p12, %p1841_p3 }
  0x6b   : > { %1849 = shalt.err (!%p1846_p8)
}
  0x6c   : > { %s1850_s15 = scalar_lea.vmem %s2137_s2, %s2124_s14  ;;  %s1949_s16 = smov [#allocation5]  }
  0x6d   : > { %p1851_p4 = scmp.ne.s32.totalorder %s2137_s2, %s1850_s15  ;;  %s1854_s28 = sshll.u32 %s1949_s16, 4  ;;  %s1855_s28 = int_to_ptr.vmem [resolvable:$false] %s1854_s28 }
  0x6e   : > { %s1856_s17 = scalar_lea.vmem %s1855_s28, 8192  ;;  %p1857_p10 = scmp.lt.s32.totalorder %s2137_s2, %s1855_s28 }
  0x6f   : > { %p1852_p11 = pnand %p1851_p4, %p1428_p5  ;;  %p1858_p0 = scmp.lt.s32.totalorder %s1856_s17, %s1850_s15 }
  0x71   : > { %p1853_p2 = pneg %p1852_p11  ;;  %p1859_p6 = por %p1858_p0, %p1857_p10 }
  0x73   : > { %p1860_p1 = pnand %p1859_p6, %p1853_p2 }
  0x75   : > { %1863 = shalt.err (!%p1860_p1)
}
  0x76   : > { %s1950_s25 = smov 128   ;;  %s1951_s8 = smov 8  }
  0x77   : > { %263 = dma.hbm_to_vmem [thread:$0]  (%p1428_p5), %s2135_s26, %s2124_s14, %s2137_s2, %s2127_s23, %s1950_s25, %s1950_s25, %s1951_s8  }
  0x78 PF: > { %269 = sbr.rel (%p2045_p13) target bundleno = 623 (0x26f), region = 40  ;;  %s2166_s9 = sand.u32 (!%p2045_p13), 1, %s1932_s19  }
  0x79   : > { %s2169_s11 = sshll.u32 (!%p2045_p13), %s2166_s9, 8  ;;  %s272_s13 = scalar_lea.sflag (!%p2045_p13), [#allocation3], %s2166_s9 }
  0x7a   : > { %s2173_s10 = scalar_lea.vmem (!%p2045_p13), [#allocation2], %s2169_s11  ;;  %p2536_p3 = scmp.ne.s32.totalorder (!%p2045_p13), %s2530_s29, 0 }
  0x7d   : > { %1907 = dma.done.wait (%p2536_p3), %s272_s13, 4096  }
  0x7e   : > { %1909 = vsyncadd (%p2536_p3), %s272_s13, 4294963200  ;;  %s280_s7 = sand.u32 1, %s2006_s22   ;;  %s2181_s23 = scalar_lea.vmem [#allocation5], %s2169_s11 }
  0x7f   : > { %s281_s14 = scalar_lea.sflag [#allocation6], %s280_s7 }
  0x80   : > { %1911 = dma.done.wait (%p2536_p3), %s281_s14, 4096  }
  0x81   : > { %1913 = vsyncadd (%p2536_p3), %s281_s14, 4294963200  ;;  %p2537_p13 = scmp.eq.s32.totalorder %s2006_s22, 0 }
  0x83   : > { %1915 = dma.done.wait (%p2537_p13), [#allocation6], 1024   ;;  %p2538_p5 = pmov %p2537_p13 }
  0x85   : > { %1917 = vsyncadd (%p2538_p5), [#allocation6], 4294966272  ;;  %p2539_p7 = pmov %p2538_p5 }
  0x86   : > { %p2540_p9 = pmov %p2538_p5 }
  0x87   : > { %1919 = dma.done.wait (%p2539_p7), [#allocation9], 1024  }
  0x88   : > { %1921 = vsyncadd (%p2540_p9), [#allocation9], 4294966272  ;;  %v1680_v0 = vld [vmem:[#allocation8 + $0x38] sm:$0xff]   ;;  %v1682_v2 = vld [vmem:[#allocation8 + $0x30] sm:$0xff]   ;;  %s2394_s2 = scalar_lea.vmem [#allocation10], %s2169_s11  ;;  %s1279_s12 = scalar_lea.sflag [#allocation4], %s2166_s9 }
  0x89   : > { %v1681_v1 = vld [vmem:[#allocation7 + $0x38] sm:$0xff]   ;;  %1515 = vmatprep.subr.bf16.mxu0 %v1680_v0  ;;  %v1683_v3 = vld [vmem:[#allocation7 + $0x30] sm:$0xff]   ;;  %v1684_v4 = vld [vmem:[#allocation8 + $0x28] sm:$0xff]   ;;  %p2541_p12 = scmp.ne.s32.totalorder %s2531_s30, 0 }
  0x8a   : > { %1563 = vmatprep.subr.bf16.mxu1 %v1681_v1  ;;  %1516 = vmatpush3.bf16.msra.mxu0 %v1680_v0  ;;  %v1685_v5 = vld [vmem:[#allocation7 + $0x28] sm:$0xff]   ;;  %v1686_v6 = vld [vmem:[#allocation8 + $0x20] sm:$0xff]   ;;  %v1688_v8 = vld [vmem:[#allocation8 + $0x18] sm:$0xff]   ;;  %s1456_s15 = sshll.u32 (%p2541_p12), %s2006_s22, 5 }
  0x8b   : > { %1564 = vmatpush3.bf16.msra.mxu1 %v1681_v1  ;;  %1517 = vmatprep.subr.bf16.mxu0 %v1682_v2  ;;  %v1687_v7 = vld [vmem:[#allocation7 + $0x20] sm:$0xff]   ;;  %v1689_v9 = vld [vmem:[#allocation7 + $0x18] sm:$0xff]   ;;  %v1690_v10 = vld [vmem:[#allocation8 + $0x10] sm:$0xff]   ;;  %s1287_s16 = ssub.s32 (%p2541_p12), 75, %s1456_s15 }
  0x8c   : > { %1565 = vmatprep.subr.bf16.mxu1 %v1683_v3  ;;  %v2196_v11 = vld [vmem:[%s2181_s23] sm:$0xff]  ;;  %v2199_v12 = vld [vmem:[%s2181_s23 + $0x8] sm:$0xff]  ;;  %v1691_v14 = vld [vmem:[#allocation7 + $0x10] sm:$0xff]   ;;  %p1288_p8 = scmp.lt.s32.totalorder (%p2541_p12), %s1287_s16, 32 }
  0x8d   : > { %v340_v13 = vld [vmem:[%s2173_s10] sm:$0xff]  ;;  %v452_v15 = vmax.f32 %v2196_v11, 0.0  ;;  %v453_v16 = vmax.f32 %v2199_v12, 0.0  ;;  %v341_v17 = vld [vmem:[%s2173_s10 + $0x8] sm:$0xff]  ;;  %v2206_v25 = vld [vmem:[%s2181_s23 + $0x10] sm:$0xff] }
  0x8e   : > { %1518 = vmatpush3.bf16.msra.mxu0 %v1682_v2  ;;  %v372_v18 = vmax.f32 %v340_v13, 0.0  ;;  %v373_v19 = vmax.f32 %v341_v17, 0.0  ;;  %v1692_v21 = vld [vmem:[#allocation8 + $0x8] sm:$0xff]   ;;  %v1694_v24 = vld [vmem:[#allocation8] sm:$0xff]   ;;  %v2209_v26 = vld [vmem:[%s2181_s23 + $0x18] sm:$0xff]  ;;  %v454_v34 = vmax.f32 %v2206_v25, 0.0 }
  0x8f   : > { %1566 = vmatpush3.bf16.msra.mxu1 %v1683_v3  ;;  %1519 = vmatprep.subr.bf16.mxu0 %v1684_v4  ;;  %v484_v20 = vpack.c.bf16 %v453_v16, %v452_v15  ;;  %v1693_v23 = vld [vmem:[#allocation7 + $0x8] sm:$0xff]   ;;  %v342_v27 = vld [vmem:[%s2173_s10 + $0x10] sm:$0xff]  ;;  %v343_v28 = vld [vmem:[%s2173_s10 + $0x18] sm:$0xff]  ;;  %v455_v35 = vmax.f32 %v2209_v26, 0.0 }
  0x90   : > { %1567 = vmatprep.subr.bf16.mxu1 %v1685_v5  ;;  %v404_v22 = vpack.c.bf16 %v373_v19, %v372_v18  ;;  %v2214_v29 = vld [vmem:[%s2181_s23 + $0x20] sm:$0xff]  ;;  %v2217_v30 = vld [vmem:[%s2181_s23 + $0x28] sm:$0xff]  ;;  %v374_v36 = vmax.f32 %v342_v27, 0.0  ;;  %v375_v37 = vmax.f32 %v343_v28, 0.0  ;;  %v2226_v45 = vld [vmem:[%s2181_s23 + $0x30] sm:$0xff] }
  0x91   : > { %1531 = vmatprep.mubr.bf16.mxu0 %v484_v20  ;;  %v1695_v31 = vld [vmem:[#allocation7] sm:$0xff]   ;;  %v345_v33 = vld [vmem:[%s2173_s10 + $0x28] sm:$0xff]  ;;  %v456_v38 = vmax.f32 %v2214_v29, 0.0  ;;  %v457_v39 = vmax.f32 %v2217_v30, 0.0  ;;  %v485_v42 = vpack.c.bf16 %v455_v35, %v454_v34  ;;  %v2229_v46 = vld [vmem:[%s2181_s23 + $0x38] sm:$0xff]  ;;  %v458_v54 = vmax.f32 %v2226_v45, 0.0 }
  0x92   : > { %1520 = vmatpush3.bf16.msra.mxu0 %v1684_v4  ;;  %1579 = vmatprep.mubr.bf16.mxu1 %v404_v22  ;;  %v344_v32 = vld [vmem:[%s2173_s10 + $0x20] sm:$0xff]  ;;  %v377_v41 = vmax.f32 %v345_v33, 0.0  ;;  %v405_v43 = vpack.c.bf16 %v375_v37, %v374_v36  ;;  %v346_v47 = vld [vmem:[%s2173_s10 + $0x30] sm:$0xff]  ;;  %v347_v49 = vld [vmem:[%s2173_s10 + $0x38] sm:$0xff]  ;;  %v459_v55 = vmax.f32 %v2229_v46, 0.0 }
  0x93   : > { %1568 = vmatpush3.bf16.msra.mxu1 %v1685_v5  ;;  %1521 = vmatprep.subr.bf16.mxu0 %v1686_v6  ;;  %v376_v40 = vmax.f32 %v344_v32, 0.0  ;;  %v486_v44 = vpack.c.bf16 %v457_v39, %v456_v38  ;;  %v2234_v50 = vld [vmem:[%s2181_s23 + $0x40] sm:$0xff]  ;;  %v2237_v51 = vld [vmem:[%s2181_s23 + $0x48] sm:$0xff]  ;;  %v378_v56 = vmax.f32 %v346_v47, 0.0  ;;  %v379_v57 = vmax.f32 %v347_v49, 0.0  ;;  %v2246_v1 = vld [vmem:[%s2181_s23 + $0x50] sm:$0xff] }
  0x94   : > { %1569 = vmatprep.subr.bf16.mxu1 %v1687_v7  ;;  %v348_v52 = vld [vmem:[%s2173_s10 + $0x40] sm:$0xff]  ;;  %v349_v53 = vld [vmem:[%s2173_s10 + $0x48] sm:$0xff]  ;;  %v460_v58 = vmax.f32 %v2234_v50, 0.0  ;;  %v461_v59 = vmax.f32 %v2237_v51, 0.0  ;;  %v487_v62 = vpack.c.bf16 %v459_v55, %v458_v54  ;;  %v2249_v2 = vld [vmem:[%s2181_s23 + $0x58] sm:$0xff] }
  0x95   : > { %v406_v48 = vpack.c.bf16 %v377_v41, %v376_v40  ;;  %v380_v60 = vmax.f32 %v348_v52, 0.0  ;;  %v381_v61 = vmax.f32 %v349_v53, 0.0  ;;  %v407_v63 = vpack.c.bf16 %v379_v57, %v378_v56  ;;  %v350_v3 = vld [vmem:[%s2173_s10 + $0x50] sm:$0xff]  ;;  %v351_v5 = vld [vmem:[%s2173_s10 + $0x58] sm:$0xff]  ;;  %v2274_v32 = vld [vmem:[%s2181_s23 + $0x80] sm:$0xff] }
  0x96   : > { %1522 = vmatpush3.bf16.msra.mxu0 %v1686_v6  ;;  %v488_v0 = vpack.c.bf16 %v461_v59, %v460_v58  ;;  %v2254_v6 = vld [vmem:[%s2181_s23 + $0x60] sm:$0xff]  ;;  %v463_v13 = vmax.f32 %v2249_v2, 0.0  ;;  %v383_v15 = vmax.f32 %v351_v5, 0.0  ;;  %v354_v27 = vld [vmem:[%s2173_s10 + $0x70] sm:$0xff]  ;;  %v2277_v33 = vld [vmem:[%s2181_s23 + $0x88] sm:$0xff]  ;;  %v468_v40 = vmax.f32 %v2274_v32, 0.0 }
  0x97   : > { %1570 = vmatpush3.bf16.msra.mxu1 %v1687_v7  ;;  %1523 = vmatprep.subr.bf16.mxu0 %v1688_v8  ;;  %v408_v4 = vpack.c.bf16 %v381_v61, %v380_v60  ;;  %v2257_v7 = vld [vmem:[%s2181_s23 + $0x68] sm:$0xff]  ;;  %v464_v16 = vmax.f32 %v2254_v6, 0.0  ;;  %v356_v34 = vld [vmem:[%s2173_s10 + $0x80] sm:$0xff]  ;;  %v386_v38 = vmax.f32 %v354_v27, 0.0  ;;  %v469_v41 = vmax.f32 %v2277_v33, 0.0  ;;  %v2286_v49 = vld [vmem:[%s2181_s23 + $0x90] sm:$0xff] }
  0x98   : > { %1571 = vmatprep.subr.bf16.mxu1 %v1689_v9  ;;  %v465_v17 = vmax.f32 %v2257_v7, 0.0  ;;  %v357_v35 = vld [vmem:[%s2173_s10 + $0x88] sm:$0xff]  ;;  %v2289_v52 = vld [vmem:[%s2181_s23 + $0x98] sm:$0xff]  ;;  %v358_v53 = vld [vmem:[%s2173_s10 + $0x90] sm:$0xff]  ;;  %v470_v60 = vmax.f32 %v2286_v49, 0.0 }
  0x99   : > { %v359_v55 = vld [vmem:[%s2173_s10 + $0x98] sm:$0xff]  ;;  %v2294_v56 = vld [vmem:[%s2181_s23 + $0xa0] sm:$0xff]  ;;  %v2297_v57 = vld [vmem:[%s2181_s23 + $0xa8] sm:$0xff]  ;;  %v471_v61 = vmax.f32 %v2289_v52, 0.0 }
  0x9a   : > { %1524 = vmatpush3.bf16.msra.mxu0 %v1688_v8  ;;  %v352_v8 = vld [vmem:[%s2173_s10 + $0x60] sm:$0xff]  ;;  %v490_v22 = vpack.c.bf16 %v465_v17, %v464_v16  ;;  %v361_v59 = vld [vmem:[%s2173_s10 + $0xa8] sm:$0xff]  ;;  %v363_v17 = vld [vmem:[%s2173_s10 + $0xb8] sm:$0xff] }
  0x9b   : > { %1572 = vmatpush3.bf16.msra.mxu1 %v1689_v9  ;;  %1525 = vmatprep.subr.bf16.mxu0 %v1690_v10  ;;  %v353_v9 = vld [vmem:[%s2173_s10 + $0x68] sm:$0xff]  ;;  %v384_v18 = vmax.f32 %v352_v8, 0.0  ;;  %v360_v58 = vld [vmem:[%s2173_s10 + $0xa0] sm:$0xff]  ;;  %v393_v5 = vmax.f32 %v361_v59, 0.0  ;;  %v493_v8 = vpack.c.bf16 %v471_v61, %v470_v60 }
  0x9c   : > { %1573 = vmatprep.subr.bf16.mxu1 %v1691_v14  ;;  %v385_v19 = vmax.f32 %v353_v9, 0.0 }
  0x9e   : > { %1526 = vmatpush3.bf16.msra.mxu0 %v1690_v10  ;;  %v462_v10 = vmax.f32 %v2246_v1, 0.0  ;;  %v410_v28 = vpack.c.bf16 %v385_v19, %v384_v18  ;;  %v2314_v18 = vld [vmem:[%s2181_s23 + $0xc0] sm:$0xff]  ;;  %v2317_v19 = vld [vmem:[%s2181_s23 + $0xc8] sm:$0xff] }
  0x9f   : > { %1574 = vmatpush3.bf16.msra.mxu1 %v1691_v14  ;;  %1527 = vmatprep.subr.bf16.mxu0 %v1692_v21  ;;  %v382_v14 = vmax.f32 %v350_v3, 0.0  ;;  %v473_v3 = vmax.f32 %v2297_v57, 0.0 }
  0xa0   : > { %1575 = vmatprep.subr.bf16.mxu1 %v1693_v23  ;;  %v489_v20 = vpack.c.bf16 %v463_v13, %v462_v10  ;;  %v2306_v13 = vld [vmem:[%s2181_s23 + $0xb0] sm:$0xff] }
  0xa2   : > { %1528 = vmatpush3.bf16.msra.mxu0 %v1692_v21  ;;  %v409_v21 = vpack.c.bf16 %v383_v15, %v382_v14  ;;  %v2309_v14 = vld [vmem:[%s2181_s23 + $0xb8] sm:$0xff]  ;;  %v362_v15 = vld [vmem:[%s2173_s10 + $0xb0] sm:$0xff] }
  0xa3   : > { %1576 = vmatpush3.bf16.msra.mxu1 %v1693_v23  ;;  %1529 = vmatprep.subr.bf16.mxu0 %v1694_v24  ;;  %v2266_v23 = vld [vmem:[%s2181_s23 + $0x70] sm:$0xff]  ;;  %v475_v27 = vmax.f32 %v2309_v14, 0.0 }
  0xa4   : > { %1577 = vmatprep.subr.bf16.mxu1 %v1695_v31  ;;  %v466_v36 = vmax.f32 %v2266_v23, 0.0 }
  0xa6   : > { %1530 = vmatpush3.bf16.msra.mxu0 %v1694_v24  ;;  %v2269_v24 = vld [vmem:[%s2181_s23 + $0x78] sm:$0xff] }
  0xa7   : > { %1578 = vmatpush3.bf16.msra.mxu1 %v1695_v31  ;;  %v355_v31 = vld [vmem:[%s2173_s10 + $0x78] sm:$0xff]  ;;  %v467_v37 = vmax.f32 %v2269_v24, 0.0 }
  0xa8   : > { %v387_v39 = vmax.f32 %v355_v31, 0.0  ;;  %v395_v31 = vmax.f32 %v363_v17, 0.0  ;;  %v371_v17 = vld [vmem:[%s2173_s10 + $0xf8] sm:$0xff] }
  0xa9   : > { %1532 = vmatmul.mubr.bf16.vlgmr.msra.gmra.mxu0 %v485_v42  ;;  %v388_v42 = vmax.f32 %v356_v34, 0.0  ;;  %v476_v34 = vmax.f32 %v2314_v18, 0.0 }
  0xaa   : > { %1580 = vmatmul.mubr.bf16.vlgmr.msra.gmra.mxu1 %v405_v43  ;;  %1535 = vmatprep.mubr.bf16.mxu0 %v486_v44  ;;  %v389_v43 = vmax.f32 %v357_v35, 0.0  ;;  %v491_v44 = vpack.c.bf16 %v467_v37, %v466_v36  ;;  %v411_v47 = vpack.c.bf16 %v387_v39, %v386_v38  ;;  %v477_v35 = vmax.f32 %v2317_v19, 0.0 }
  0xab   : > { %1583 = vmatprep.mubr.bf16.mxu1 %v406_v48  ;;  %v492_v48 = vpack.c.bf16 %v469_v41, %v468_v40  ;;  %v2326_v41 = vld [vmem:[%s2181_s23 + $0xd0] sm:$0xff] }
  0xac   : > { %v412_v54 = vpack.c.bf16 %v389_v43, %v388_v42  ;;  %v496_v40 = vpack.c.bf16 %v477_v35, %v476_v34  ;;  %v2329_v42 = vld [vmem:[%s2181_s23 + $0xd8] sm:$0xff]  ;;  %v366_v43 = vld [vmem:[%s2173_s10 + $0xd0] sm:$0xff] }
  0xad   : > { %v479_v59 = vmax.f32 %v2329_v42, 0.0  ;;  %v398_v60 = vmax.f32 %v366_v43, 0.0 }
  0xb1   : > { %1536 = vmatmul.mubr.bf16.gmra.mxu0 %v487_v62  ;;  %v390_v62 = vmax.f32 %v358_v53, 0.0  ;;  %v2337_v53 = vld [vmem:[%s2181_s23 + $0xe8] sm:$0xff] }
  0xb2   : > { %1584 = vmatmul.mubr.bf16.gmra.mxu1 %v407_v63  ;;  %1539 = vmatprep.mubr.bf16.mxu0 %v488_v0  ;;  %v391_v63 = vmax.f32 %v359_v55, 0.0  ;;  %v472_v0 = vmax.f32 %v2294_v56, 0.0  ;;  %v369_v55 = vld [vmem:[%s2173_s10 + $0xe8] sm:$0xff] }
  0xb3   : > { %1587 = vmatprep.mubr.bf16.mxu1 %v408_v4  ;;  %v392_v4 = vmax.f32 %v360_v58, 0.0  ;;  %v478_v58 = vmax.f32 %v2326_v41, 0.0 }
  0xb4   : > { %v413_v9 = vpack.c.bf16 %v391_v63, %v390_v62  ;;  %v494_v10 = vpack.c.bf16 %v473_v3, %v472_v0  ;;  %v481_v63 = vmax.f32 %v2337_v53, 0.0  ;;  %v401_v3 = vmax.f32 %v369_v55, 0.0 }
  0xb5   : > { %v414_v16 = vpack.c.bf16 %v393_v5, %v392_v4  ;;  %v497_v4 = vpack.c.bf16 %v479_v59, %v478_v58 }
  0xb9   : > { %1540 = vmatmul.mubr.bf16.gmra.mxu0 %v489_v20  ;;  %v364_v20 = vld [vmem:[%s2173_s10 + $0xc0] sm:$0xff] }
  0xba   : > { %1588 = vmatmul.mubr.bf16.gmra.mxu1 %v409_v21  ;;  %1543 = vmatprep.mubr.bf16.mxu0 %v490_v22  ;;  %v365_v21 = vld [vmem:[%s2173_s10 + $0xc8] sm:$0xff]  ;;  %v474_v22 = vmax.f32 %v2306_v13, 0.0  ;;  %v396_v36 = vmax.f32 %v364_v20, 0.0 }
  0xbb   : > { %1591 = vmatprep.mubr.bf16.mxu1 %v410_v28  ;;  %v394_v28 = vmax.f32 %v362_v15, 0.0  ;;  %v397_v37 = vmax.f32 %v365_v21, 0.0 }
  0xbc   : > { %v495_v38 = vpack.c.bf16 %v475_v27, %v474_v22  ;;  %v403_v27 = vmax.f32 %v371_v17, 0.0 }
  0xbd   : > { %v415_v39 = vpack.c.bf16 %v395_v31, %v394_v28 }
  0xc1   : > { %1544 = vmatmul.mubr.bf16.gmra.mxu0 %v491_v44  ;;  %v416_v44 = vpack.c.bf16 %v397_v37, %v396_v36  ;;  %v2358_v36 = vld [vmem:[%s2524_s4] ss:$0 sm:$0xff] }
  0xc2   : > { %1592 = vmatmul.mubr.bf16.gmra.mxu1 %v411_v47  ;;  %1547 = vmatprep.mubr.bf16.mxu0 %v492_v48  ;;  %v367_v47 = vld [vmem:[%s2173_s10 + $0xd8] sm:$0xff]  ;;  %v2334_v48 = vld [vmem:[%s2181_s23 + $0xe0] sm:$0xff] }
  0xc3   : > { %1595 = vmatprep.mubr.bf16.mxu1 %v412_v54  ;;  %v368_v54 = vld [vmem:[%s2173_s10 + $0xe0] sm:$0xff]  ;;  %v399_v61 = vmax.f32 %v367_v47, 0.0  ;;  %v480_v62 = vmax.f32 %v2334_v48, 0.0 }
  0xc4   : > { %v400_v0 = vmax.f32 %v368_v54, 0.0 }
  0xc5   : > { %v417_v5 = vpack.c.bf16 %v399_v61, %v398_v60 }
  0xc6   : > { %v418_v15 = vpack.c.bf16 %v401_v3, %v400_v0 }
  0xc9   : > { %1548 = vmatmul.mubr.bf16.gmra.mxu0 %v493_v8  ;;  %v498_v8 = vpack.c.bf16 %v481_v63, %v480_v62 }
  0xca   : > { %1596 = vmatmul.mubr.bf16.gmra.mxu1 %v413_v9  ;;  %1551 = vmatprep.mubr.bf16.mxu0 %v494_v10  ;;  %v2346_v9 = vld [vmem:[%s2181_s23 + $0xf0] sm:$0xff]  ;;  %v2349_v10 = vld [vmem:[%s2181_s23 + $0xf8] sm:$0xff] }
  0xcb   : > { %1599 = vmatprep.mubr.bf16.mxu1 %v414_v16  ;;  %v370_v16 = vld [vmem:[%s2173_s10 + $0xf0] sm:$0xff]  ;;  %v482_v20 = vmax.f32 %v2346_v9, 0.0  ;;  %v483_v21 = vmax.f32 %v2349_v10, 0.0 }
  0xcc   : > { %v402_v22 = vmax.f32 %v370_v16, 0.0 }
  0xcd   : > { %v499_v28 = vpack.c.bf16 %v483_v21, %v482_v20 }
  0xce   : > { %v419_v31 = vpack.c.bf16 %v403_v27, %v402_v22 }
  0xd1   : > { %1552 = vmatmul.mubr.bf16.gmra.mxu0 %v495_v38 }
  0xd2   : > { %1600 = vmatmul.mubr.bf16.gmra.mxu1 %v415_v39  ;;  %1555 = vmatprep.mubr.bf16.mxu0 %v496_v40 }
  0xd3   : > { %1603 = vmatprep.mubr.bf16.mxu1 %v416_v44 }
  0xd9   : > { %1556 = vmatmul.mubr.bf16.gmra.mxu0 %v497_v4 }
  0xda   : > { %1604 = vmatmul.mubr.bf16.gmra.mxu1 %v417_v5  ;;  %1559 = vmatprep.mubr.bf16.mxu0 %v498_v8 }
  0xdb   : > { %1607 = vmatprep.mubr.bf16.mxu1 %v418_v15 }
  0xe1   : > { %1560 = vmatmul.mubr.bf16.gmra.mxu0 %v499_v28 }
  0xe2   : > { %1608 = vmatmul.mubr.bf16.gmra.mxu1 %v419_v31 }
 0x169   : > { %v1533_v34 = vpop.f32.mrf.mxu0 }
 0x16a   : > { %v1581_v35 = vpop.f32.mrf.mxu1 }
 0x16b   : > { %v832_v37 = vadd.f32 %v1581_v35, %v1533_v34  ;;  %v614_v38 = vpop.f32.mrf.mxu0 }
 0x16c   : > { %v823_v39 = vpop.f32.mrf.mxu1 }
 0x16d   : > { %v959_v40 = vadd.f32 %v2358_v36, %v832_v37  ;;  %v824_v43 = vadd.f32 %v823_v39, %v614_v38  ;;  %v1534_v44 = vpop.f32.mrf.mxu0 }
 0x16e   : > { %v1582_v47 = vpop.f32.mrf.mxu1 }
 0x16f   : > { %v991_v54 = vmul.f32 0.5, %v959_v40  ;;  %v957_v55 = vadd.f32 %v2358_v36, %v824_v43  ;;  %v835_v58 = vadd.f32 %v1582_v47, %v1534_v44  ;;  %v617_v59 = vpop.f32.mrf.mxu0 }
 0x170   : > { %v826_v60 = vpop.f32.mrf.mxu1 }
 0x171   : > { %v989_v61 = vmul.f32 0.5, %v957_v55  ;;  %v960_v62 = vadd.f32 %v2358_v36, %v835_v58  ;;  %v827_v63 = vadd.f32 %v826_v60, %v617_v59  ;;  %v1537_v0 = vpop.f32.mrf.mxu0  ;;  %1696 = vtanh.f32 %v991_v54 }
 0x172   : > { %v1585_v3 = vpop.f32.mrf.mxu1 }
 0x173   : > { %v992_v4 = vmul.f32 0.5, %v960_v62  ;;  %v958_v5 = vadd.f32 %v2358_v36, %v827_v63  ;;  %v848_v8 = vadd.f32 %v1585_v3, %v1537_v0  ;;  %v630_v15 = vpop.f32.mrf.mxu0  ;;  %1698 = vtanh.f32 %v989_v61 }
 0x174   : > { %v839_v16 = vpop.f32.mrf.mxu1 }
 0x175   : > { %1700 = vtanh.f32 %v992_v4  ;;  %v990_v17 = vmul.f32 0.5, %v958_v5  ;;  %v963_v20 = vadd.f32 %v2358_v36, %v848_v8  ;;  %v840_v21 = vadd.f32 %v839_v16, %v630_v15  ;;  %v1538_v22 = vpop.f32.mrf.mxu0 }
 0x176   : > { %v1586_v27 = vpop.f32.mrf.mxu1 }
 0x177   : > { %1702 = vtanh.f32 %v990_v17  ;;  %v995_v28 = vmul.f32 0.5, %v963_v20  ;;  %v961_v31 = vadd.f32 %v2358_v36, %v840_v21  ;;  %v851_v34 = vadd.f32 %v1586_v27, %v1538_v22  ;;  %v633_v35 = vpop.f32.mrf.mxu0 }
 0x178   : > { %v842_v37 = vpop.f32.mrf.mxu1 }
 0x179   : > { %v964_v38 = vadd.f32 %v2358_v36, %v851_v34  ;;  %v843_v39 = vadd.f32 %v842_v37, %v633_v35  ;;  %v1541_v40 = vpop.f32.mrf.mxu0  ;;  %1704 = vtanh.f32 %v995_v28  ;;  %v993_v44 = vmul.f32 0.5, %v961_v31 }
 0x17a   : > { %v1589_v43 = vpop.f32.mrf.mxu1 }
 0x17b   : > { %v996_v47 = vmul.f32 0.5, %v964_v38  ;;  %v962_v54 = vadd.f32 %v2358_v36, %v843_v39  ;;  %v864_v55 = vadd.f32 %v1589_v43, %v1541_v40  ;;  %v646_v58 = vpop.f32.mrf.mxu0 }
 0x17c   : > { %v855_v59 = vpop.f32.mrf.mxu1 }
 0x17d   : > { %1706 = vtanh.f32 %v996_v47  ;;  %v994_v60 = vmul.f32 0.5, %v962_v54  ;;  %v967_v61 = vadd.f32 %v2358_v36, %v864_v55  ;;  %v856_v62 = vadd.f32 %v855_v59, %v646_v58  ;;  %v1542_v63 = vpop.f32.mrf.mxu0 }
 0x17e   : > { %v1697_v0 = vpop.eup %1696  ;;  %v1590_v3 = vpop.f32.mrf.mxu1  ;;  %1708 = vtanh.f32 %v993_v44 }
 0x17f   : > { %v999_v4 = vmul.f32 0.5, %v967_v61  ;;  %v965_v5 = vadd.f32 %v2358_v36, %v856_v62  ;;  %v867_v8 = vadd.f32 %v1590_v3, %v1542_v63  ;;  %1057 = vadd.xlane.f32.xlu1 %v1697_v0  ;;  %v649_v15 = vpop.f32.mrf.mxu0  ;;  %1710 = vtanh.f32 %v994_v60 }
 0x180   : > { %v1699_v16 = vpop.eup %1698  ;;  %v858_v17 = vpop.f32.mrf.mxu1 }
 0x181   : > { %v968_v20 = vadd.f32 %v2358_v36, %v867_v8  ;;  %v859_v21 = vadd.f32 %v858_v17, %v649_v15  ;;  %1053 = vadd.xlane.f32.xlu0 %v1699_v16  ;;  %v1545_v22 = vpop.f32.mrf.mxu0  ;;  %1712 = vtanh.f32 %v999_v4  ;;  %v997_v31 = vmul.f32 0.5, %v965_v5 }
 0x182   : > { %v1701_v27 = vpop.eup %1700  ;;  %v1593_v28 = vpop.f32.mrf.mxu1 }
 0x183   : > { %v1000_v34 = vmul.f32 0.5, %v968_v20  ;;  %v966_v35 = vadd.f32 %v2358_v36, %v859_v21  ;;  %v880_v37 = vadd.f32 %v1593_v28, %v1545_v22  ;;  %1059 = vadd.xlane.f32.xlu1 %v1701_v27  ;;  %v662_v38 = vpop.f32.mrf.mxu0 }
 0x184   : > { %v1703_v39 = vpop.eup %1702  ;;  %v871_v40 = vpop.f32.mrf.mxu1 }
 0x185   : > { %1714 = vtanh.f32 %v1000_v34  ;;  %v998_v43 = vmul.f32 0.5, %v966_v35  ;;  %v971_v44 = vadd.f32 %v2358_v36, %v880_v37  ;;  %v872_v47 = vadd.f32 %v871_v40, %v662_v38  ;;  %1055 = vadd.xlane.f32.xlu0 %v1703_v39  ;;  %v1546_v54 = vpop.f32.mrf.mxu0 }
 0x186   : > { %v1594_v55 = vpop.f32.mrf.mxu1  ;;  %v1705_v58 = vpop.eup %1704  ;;  %1716 = vtanh.f32 %v997_v31 }
 0x187   : > { %v1003_v59 = vmul.f32 0.5, %v971_v44  ;;  %v969_v60 = vadd.f32 %v2358_v36, %v872_v47  ;;  %v883_v61 = vadd.f32 %v1594_v55, %v1546_v54  ;;  %v665_v62 = vpop.f32.mrf.mxu0  ;;  %1718 = vtanh.f32 %v998_v43 }
 0x188   : > { %v874_v63 = vpop.f32.mrf.mxu1 }
 0x189   : > { %v972_v0 = vadd.f32 %v2358_v36, %v883_v61  ;;  %v875_v3 = vadd.f32 %v874_v63, %v665_v62  ;;  %1065 = vadd.xlane.f32.xlu0 %v1705_v58  ;;  %v1549_v4 = vpop.f32.mrf.mxu0  ;;  %1720 = vtanh.f32 %v1003_v59  ;;  %v1001_v15 = vmul.f32 0.5, %v969_v60 }
 0x18a   : > { %v1707_v5 = vpop.eup %1706  ;;  %v1597_v8 = vpop.f32.mrf.mxu1 }
 0x18b   : > { %v1004_v16 = vmul.f32 0.5, %v972_v0  ;;  %v970_v17 = vadd.f32 %v2358_v36, %v875_v3  ;;  %v896_v20 = vadd.f32 %v1597_v8, %v1549_v4  ;;  %1067 = vadd.xlane.f32.xlu1 %v1707_v5  ;;  %v678_v21 = vpop.f32.mrf.mxu0  ;;  %v1709_v22 = vpop.eup %1708 }
 0x18c   : > { %v887_v27 = vpop.f32.mrf.mxu1  ;;  %v1711_v37 = vpop.eup %1710 }
 0x18d   : > { %1722 = vtanh.f32 %v1004_v16  ;;  %v1002_v28 = vmul.f32 0.5, %v970_v17  ;;  %v975_v31 = vadd.f32 %v2358_v36, %v896_v20  ;;  %v888_v34 = vadd.f32 %v887_v27, %v678_v21  ;;  %1061 = vadd.xlane.f32.xlu0 %v1709_v22  ;;  %v1550_v35 = vpop.f32.mrf.mxu0 }
 0x18e   : > { %v1598_v38 = vpop.f32.mrf.mxu1  ;;  %v1713_v39 = vpop.eup %1712  ;;  %1724 = vtanh.f32 %v1001_v15 }
 0x18f   : > { %v1007_v40 = vmul.f32 0.5, %v975_v31  ;;  %v973_v43 = vadd.f32 %v2358_v36, %v888_v34  ;;  %v899_v44 = vadd.f32 %v1598_v38, %v1550_v35  ;;  %1063 = vadd.xlane.f32.xlu1 %v1711_v37  ;;  %v681_v47 = vpop.f32.mrf.mxu0  ;;  %1726 = vtanh.f32 %v1002_v28 }
 0x190   : > { %v890_v54 = vpop.f32.mrf.mxu1 }
 0x191   : > { %v976_v55 = vadd.f32 %v2358_v36, %v899_v44  ;;  %v891_v58 = vadd.f32 %v890_v54, %v681_v47  ;;  %1073 = vadd.xlane.f32.xlu0 %v1713_v39  ;;  %v1553_v59 = vpop.f32.mrf.mxu0  ;;  %1728 = vtanh.f32 %v1007_v40  ;;  %v1005_v62 = vmul.f32 0.5, %v973_v43 }
 0x192   : > { %v1715_v60 = vpop.eup %1714  ;;  %v1601_v61 = vpop.f32.mrf.mxu1 }
 0x193   : > { %v1008_v63 = vmul.f32 0.5, %v976_v55  ;;  %v974_v0 = vadd.f32 %v2358_v36, %v891_v58  ;;  %v912_v3 = vadd.f32 %v1601_v61, %v1553_v59  ;;  %1075 = vadd.xlane.f32.xlu1 %v1715_v60  ;;  %v694_v4 = vpop.f32.mrf.mxu0  ;;  %v1717_v5 = vpop.eup %1716 }
 0x194   : > { %v903_v8 = vpop.f32.mrf.mxu1  ;;  %v1719_v21 = vpop.eup %1718 }
 0x195   : > { %1730 = vtanh.f32 %v1008_v63  ;;  %v1006_v15 = vmul.f32 0.5, %v974_v0  ;;  %v979_v16 = vadd.f32 %v2358_v36, %v912_v3  ;;  %v904_v17 = vadd.f32 %v903_v8, %v694_v4  ;;  %1069 = vadd.xlane.f32.xlu0 %v1717_v5  ;;  %v1554_v20 = vpop.f32.mrf.mxu0 }
 0x196   : > { %v1602_v22 = vpop.f32.mrf.mxu1  ;;  %v1721_v27 = vpop.eup %1720  ;;  %1732 = vtanh.f32 %v1005_v62 }
 0x197   : > { %v1011_v28 = vmul.f32 0.5, %v979_v16  ;;  %v977_v31 = vadd.f32 %v2358_v36, %v904_v17  ;;  %v915_v34 = vadd.f32 %v1602_v22, %v1554_v20  ;;  %1071 = vadd.xlane.f32.xlu1 %v1719_v21  ;;  %v697_v35 = vpop.f32.mrf.mxu0  ;;  %1734 = vtanh.f32 %v1006_v15 }
 0x198   : > { %v906_v37 = vpop.f32.mrf.mxu1 }
 0x199   : > { %v980_v38 = vadd.f32 %v2358_v36, %v915_v34  ;;  %v907_v39 = vadd.f32 %v906_v37, %v697_v35  ;;  %1081 = vadd.xlane.f32.xlu0 %v1721_v27  ;;  %v1557_v40 = vpop.f32.mrf.mxu0  ;;  %1736 = vtanh.f32 %v1011_v28  ;;  %v1009_v47 = vmul.f32 0.5, %v977_v31 }
 0x19a   : > { %v1723_v43 = vpop.eup %1722  ;;  %v1605_v44 = vpop.f32.mrf.mxu1 }
 0x19b   : > { %v1012_v54 = vmul.f32 0.5, %v980_v38  ;;  %v978_v55 = vadd.f32 %v2358_v36, %v907_v39  ;;  %v928_v58 = vadd.f32 %v1605_v44, %v1557_v40  ;;  %1083 = vadd.xlane.f32.xlu1 %v1723_v43  ;;  %v710_v59 = vpop.f32.mrf.mxu0  ;;  %v1725_v60 = vpop.eup %1724 }
 0x19c   : > { %v919_v61 = vpop.f32.mrf.mxu1  ;;  %v1727_v4 = vpop.eup %1726 }
 0x19d   : > { %1738 = vtanh.f32 %v1012_v54  ;;  %v1010_v62 = vmul.f32 0.5, %v978_v55  ;;  %v983_v63 = vadd.f32 %v2358_v36, %v928_v58  ;;  %v920_v0 = vadd.f32 %v919_v61, %v710_v59  ;;  %1077 = vadd.xlane.f32.xlu0 %v1725_v60  ;;  %v1558_v3 = vpop.f32.mrf.mxu0 }
 0x19e   : > { %v1606_v5 = vpop.f32.mrf.mxu1  ;;  %v1729_v8 = vpop.eup %1728  ;;  %1740 = vtanh.f32 %v1009_v47 }
 0x19f   : > { %v1015_v15 = vmul.f32 0.5, %v983_v63  ;;  %v981_v16 = vadd.f32 %v2358_v36, %v920_v0  ;;  %v931_v17 = vadd.f32 %v1606_v5, %v1558_v3  ;;  %1079 = vadd.xlane.f32.xlu1 %v1727_v4  ;;  %v713_v20 = vpop.f32.mrf.mxu0  ;;  %1742 = vtanh.f32 %v1010_v62 }
 0x1a0   : > { %v922_v21 = vpop.f32.mrf.mxu1 }
 0x1a1   : > { %v984_v22 = vadd.f32 %v2358_v36, %v931_v17  ;;  %v923_v27 = vadd.f32 %v922_v21, %v713_v20  ;;  %1089 = vadd.xlane.f32.xlu0 %v1729_v8  ;;  %v1561_v28 = vpop.f32.mrf.mxu0  ;;  %1744 = vtanh.f32 %v1015_v15  ;;  %v1013_v35 = vmul.f32 0.5, %v981_v16 }
 0x1a2   : > { %v1731_v31 = vpop.eup %1730  ;;  %v1609_v34 = vpop.f32.mrf.mxu1 }
 0x1a3   : > { %v1016_v37 = vmul.f32 0.5, %v984_v22  ;;  %v982_v38 = vadd.f32 %v2358_v36, %v923_v27  ;;  %v944_v39 = vadd.f32 %v1609_v34, %v1561_v28  ;;  %1091 = vadd.xlane.f32.xlu1 %v1731_v31  ;;  %v726_v40 = vpop.f32.mrf.mxu0  ;;  %v1733_v43 = vpop.eup %1732 }
 0x1a4   : > { %v935_v44 = vpop.f32.mrf.mxu1  ;;  %v1735_v58 = vpop.eup %1734 }
 0x1a5   : > { %1746 = vtanh.f32 %v1016_v37  ;;  %v1014_v47 = vmul.f32 0.5, %v982_v38  ;;  %v936_v54 = vadd.f32 %v935_v44, %v726_v40  ;;  %1085 = vadd.xlane.f32.xlu0 %v1733_v43  ;;  %v1562_v55 = vpop.f32.mrf.mxu0  ;;  %v987_v59 = vadd.f32 %v2358_v36, %v944_v39 }
 0x1a6   : > { %v1610_v60 = vpop.f32.mrf.mxu1  ;;  %v1737_v61 = vpop.eup %1736  ;;  %1748 = vtanh.f32 %v1013_v35 }
 0x1a7   : > { %v985_v62 = vadd.f32 %v2358_v36, %v936_v54  ;;  %v947_v63 = vadd.f32 %v1610_v60, %v1562_v55  ;;  %1087 = vadd.xlane.f32.xlu1 %v1735_v58  ;;  %v729_v0 = vpop.f32.mrf.mxu0  ;;  %1750 = vtanh.f32 %v1014_v47  ;;  %v1019_v15 = vmul.f32 0.5, %v987_v59 }
 0x1a8   : > { %v938_v3 = vpop.f32.mrf.mxu1 }
 0x1a9   : > { %v1017_v4 = vmul.f32 0.5, %v985_v62  ;;  %v939_v5 = vadd.f32 %v938_v3, %v729_v0  ;;  %1097 = vadd.xlane.f32.xlu0 %v1737_v61  ;;  %v988_v16 = vadd.f32 %v2358_v36, %v947_v63 }
 0x1aa   : > { %v1739_v8 = vpop.eup %1738 }
 0x1ab   : > { %1752 = vtanh.f32 %v1017_v4  ;;  %v986_v17 = vadd.f32 %v2358_v36, %v939_v5  ;;  %1099 = vadd.xlane.f32.xlu1 %v1739_v8  ;;  %v1741_v20 = vpop.eup %1740  ;;  %v1020_v28 = vmul.f32 0.5, %v988_v16 }
 0x1ac   : > { %v1743_v22 = vpop.eup %1742  ;;  %1754 = vtanh.f32 %v1019_v15 }
 0x1ad   : > { %v1018_v21 = vmul.f32 0.5, %v986_v17  ;;  %1093 = vadd.xlane.f32.xlu0 %v1741_v20 }
 0x1ae   : > { %v1745_v27 = vpop.eup %1744 }
 0x1af   : > { %1756 = vtanh.f32 %v1018_v21  ;;  %1095 = vadd.xlane.f32.xlu1 %v1743_v22 }
 0x1b0   : > { %1758 = vtanh.f32 %v1020_v28 }
 0x1b1   : > { %1105 = vadd.xlane.f32.xlu0 %v1745_v27 }
 0x1b2   : > { %v1747_v31 = vpop.eup %1746 }
 0x1b3   : > { %1107 = vadd.xlane.f32.xlu1 %v1747_v31  ;;  %v1749_v34 = vpop.eup %1748 }
 0x1b4   : > { %v1751_v35 = vpop.eup %1750 }
 0x1b5   : > { %1101 = vadd.xlane.f32.xlu0 %v1749_v34 }
 0x1b7   : > { %1103 = vadd.xlane.f32.xlu1 %v1751_v35 }
 0x1b8   : > { %v1753_v37 = vpop.eup %1752 }
 0x1b9   : > { %1109 = vadd.xlane.f32.xlu0 %v1753_v37  ;;  %v1755_v36 = vpop.eup %1754 }
 0x1bc   : > { %v1757_v38 = vpop.eup %1756 }
 0x1bd   : > { %1111 = vadd.xlane.f32.xlu1 %v1757_v38  ;;  %1113 = vadd.xlane.f32.xlu0 %v1755_v36  ;;  %v1759_v39 = vpop.eup %1758 }
 0x1c1   : > { %1115 = vadd.xlane.f32.xlu1 %v1759_v39 }
 0x208   : > { %v1058_v40 = vpop.xlane.xlu1 %1057 }
 0x209   : > { %v1120_v43 = vmul.f32 0.0078125, %v1058_v40 }
 0x20a   : > { %v1054_v44 = vpop.xlane.xlu0 %1053 }
 0x20b   : > { %v1152_v47 = vmul.f32 0.5, %v1120_v43  ;;  %v1118_v54 = vmul.f32 0.0078125, %v1054_v44 }
 0x20c   : > { %v1060_v55 = vpop.xlane.xlu1 %1059 }
 0x20d   : > { %v1184_v58 = vadd.f32 0.5, %v1152_v47  ;;  %v1150_v59 = vmul.f32 0.5, %v1118_v54  ;;  %v1121_v60 = vmul.f32 0.0078125, %v1060_v55 }
 0x20e   : > { %v1056_v61 = vpop.xlane.xlu0 %1055 }
 0x20f   : > { %v1216_v62 = vmul.f32 %v1184_v58, %v2206_v25  ;;  %v1182_v63 = vadd.f32 0.5, %v1150_v59  ;;  %v1153_v0 = vmul.f32 0.5, %v1121_v60  ;;  %v1119_v3 = vmul.f32 0.0078125, %v1056_v61 }
 0x211   : > { %1248 = vst [vmem:[%s2394_s2 + $0x10] sm:$0xff] %v1216_v62  ;;  %v1214_v4 = vmul.f32 %v1182_v63, %v2196_v11  ;;  %v1185_v5 = vadd.f32 0.5, %v1153_v0  ;;  %v1151_v8 = vmul.f32 0.5, %v1119_v3 }
 0x212   : > { %v1066_v15 = vpop.xlane.xlu0 %1065 }
 0x213   : > { %1246 = vst [vmem:[%s2394_s2] sm:$0xff] %v1214_v4  ;;  %v1217_v16 = vmul.f32 %v1185_v5, %v2209_v26  ;;  %v1183_v17 = vadd.f32 0.5, %v1151_v8  ;;  %v1124_v25 = vmul.f32 0.0078125, %v1066_v15 }
 0x214   : > { %v1068_v20 = vpop.xlane.xlu1 %1067 }
 0x215   : > { %1249 = vst [vmem:[%s2394_s2 + $0x18] sm:$0xff] %v1217_v16  ;;  %v1215_v21 = vmul.f32 %v1183_v17, %v2199_v12  ;;  %v1156_v22 = vmul.f32 0.5, %v1124_v25  ;;  %v1125_v27 = vmul.f32 0.0078125, %v1068_v20 }
 0x216   : > { %v1062_v28 = vpop.xlane.xlu0 %1061 }
 0x217   : > { %1247 = vst [vmem:[%s2394_s2 + $0x8] sm:$0xff] %v1215_v21  ;;  %v1188_v31 = vadd.f32 0.5, %v1156_v22  ;;  %v1157_v11 = vmul.f32 0.5, %v1125_v27  ;;  %v1122_v34 = vmul.f32 0.0078125, %v1062_v28 }
 0x218   : > { %v1064_v35 = vpop.xlane.xlu1 %1063 }
 0x219   : > { %v1220_v37 = vmul.f32 %v1188_v31, %v2226_v45  ;;  %v1189_v36 = vadd.f32 0.5, %v1157_v11  ;;  %v1154_v26 = vmul.f32 0.5, %v1122_v34  ;;  %v1123_v38 = vmul.f32 0.0078125, %v1064_v35 }
 0x21a   : > { %v1074_v39 = vpop.xlane.xlu0 %1073 }
 0x21b   : > { %1252 = vst [vmem:[%s2394_s2 + $0x30] sm:$0xff] %v1220_v37  ;;  %v1221_v40 = vmul.f32 %v1189_v36, %v2229_v46  ;;  %v1186_v12 = vadd.f32 0.5, %v1154_v26  ;;  %v1155_v43 = vmul.f32 0.5, %v1123_v38  ;;  %v1128_v44 = vmul.f32 0.0078125, %v1074_v39 }
 0x21c   : > { %v1076_v47 = vpop.xlane.xlu1 %1075 }
 0x21d   : > { %1253 = vst [vmem:[%s2394_s2 + $0x38] sm:$0xff] %v1221_v40  ;;  %v1218_v54 = vmul.f32 %v1186_v12, %v2214_v29  ;;  %v1187_v55 = vadd.f32 0.5, %v1155_v43  ;;  %v1160_v58 = vmul.f32 0.5, %v1128_v44  ;;  %v1129_v45 = vmul.f32 0.0078125, %v1076_v47 }
 0x21e   : > { %v1070_v59 = vpop.xlane.xlu0 %1069 }
 0x21f   : > { %1250 = vst [vmem:[%s2394_s2 + $0x20] sm:$0xff] %v1218_v54  ;;  %v1219_v60 = vmul.f32 %v1187_v55, %v2217_v30  ;;  %v1192_v61 = vadd.f32 0.5, %v1160_v58  ;;  %v1161_v62 = vmul.f32 0.5, %v1129_v45  ;;  %v1126_v46 = vmul.f32 0.0078125, %v1070_v59 }
 0x220   : > { %v1072_v63 = vpop.xlane.xlu1 %1071 }
 0x221   : > { %1251 = vst [vmem:[%s2394_s2 + $0x28] sm:$0xff] %v1219_v60  ;;  %v1224_v0 = vmul.f32 %v1192_v61, %v2246_v1  ;;  %v1193_v3 = vadd.f32 0.5, %v1161_v62  ;;  %v1158_v4 = vmul.f32 0.5, %v1126_v46  ;;  %v1127_v29 = vmul.f32 0.0078125, %v1072_v63 }
 0x222   : > { %v1082_v5 = vpop.xlane.xlu0 %1081 }
 0x223   : > { %1256 = vst [vmem:[%s2394_s2 + $0x50] sm:$0xff] %v1224_v0  ;;  %v1225_v8 = vmul.f32 %v1193_v3, %v2249_v2  ;;  %v1190_v15 = vadd.f32 0.5, %v1158_v4  ;;  %v1159_v16 = vmul.f32 0.5, %v1127_v29  ;;  %v1132_v30 = vmul.f32 0.0078125, %v1082_v5 }
 0x224   : > { %v1084_v17 = vpop.xlane.xlu1 %1083 }
 0x225   : > { %1257 = vst [vmem:[%s2394_s2 + $0x58] sm:$0xff] %v1225_v8  ;;  %v1222_v25 = vmul.f32 %v1190_v15, %v2234_v50  ;;  %v1191_v20 = vadd.f32 0.5, %v1159_v16  ;;  %v1164_v21 = vmul.f32 0.5, %v1132_v30  ;;  %v1133_v1 = vmul.f32 0.0078125, %v1084_v17 }
 0x226   : > { %v1078_v22 = vpop.xlane.xlu0 %1077 }
 0x227   : > { %1254 = vst [vmem:[%s2394_s2 + $0x40] sm:$0xff] %v1222_v25  ;;  %v1223_v27 = vmul.f32 %v1191_v20, %v2237_v51  ;;  %v1196_v28 = vadd.f32 0.5, %v1164_v21  ;;  %v1165_v31 = vmul.f32 0.5, %v1133_v1  ;;  %v1130_v2 = vmul.f32 0.0078125, %v1078_v22 }
 0x228   : > { %v1080_v11 = vpop.xlane.xlu1 %1079 }
 0x229   : > { %1255 = vst [vmem:[%s2394_s2 + $0x48] sm:$0xff] %v1223_v27  ;;  %v1228_v34 = vmul.f32 %v1196_v28, %v2266_v23  ;;  %v1197_v35 = vadd.f32 0.5, %v1165_v31  ;;  %v1162_v37 = vmul.f32 0.5, %v1130_v2  ;;  %v1131_v50 = vmul.f32 0.0078125, %v1080_v11 }
 0x22a   : > { %v1090_v36 = vpop.xlane.xlu0 %1089 }
 0x22b   : > { %1260 = vst [vmem:[%s2394_s2 + $0x70] sm:$0xff] %v1228_v34  ;;  %v1229_v26 = vmul.f32 %v1197_v35, %v2269_v24  ;;  %v1194_v38 = vadd.f32 0.5, %v1162_v37  ;;  %v1163_v39 = vmul.f32 0.5, %v1131_v50  ;;  %v1136_v51 = vmul.f32 0.0078125, %v1090_v36 }
 0x22c   : > { %v1092_v40 = vpop.xlane.xlu1 %1091 }
 0x22d   : > { %1261 = vst [vmem:[%s2394_s2 + $0x78] sm:$0xff] %v1229_v26  ;;  %v1226_v12 = vmul.f32 %v1194_v38, %v2254_v6  ;;  %v1195_v43 = vadd.f32 0.5, %v1163_v39  ;;  %v1168_v44 = vmul.f32 0.5, %v1136_v51  ;;  %v1137_v23 = vmul.f32 0.0078125, %v1092_v40 }
 0x22e   : > { %v1086_v47 = vpop.xlane.xlu0 %1085 }
 0x22f   : > { %1258 = vst [vmem:[%s2394_s2 + $0x60] sm:$0xff] %v1226_v12  ;;  %v1227_v54 = vmul.f32 %v1195_v43, %v2257_v7  ;;  %v1200_v55 = vadd.f32 0.5, %v1168_v44  ;;  %v1169_v58 = vmul.f32 0.5, %v1137_v23  ;;  %v1134_v24 = vmul.f32 0.0078125, %v1086_v47 }
 0x230   : > { %v1088_v45 = vpop.xlane.xlu1 %1087 }
 0x231   : > { %1259 = vst [vmem:[%s2394_s2 + $0x68] sm:$0xff] %v1227_v54  ;;  %v1232_v59 = vmul.f32 %v1200_v55, %v2286_v49  ;;  %v1201_v60 = vadd.f32 0.5, %v1169_v58  ;;  %v1166_v61 = vmul.f32 0.5, %v1134_v24  ;;  %v1135_v6 = vmul.f32 0.0078125, %v1088_v45 }
 0x232   : > { %v1098_v62 = vpop.xlane.xlu0 %1097 }
 0x233   : > { %1264 = vst [vmem:[%s2394_s2 + $0x90] sm:$0xff] %v1232_v59  ;;  %v1233_v46 = vmul.f32 %v1201_v60, %v2289_v52  ;;  %v1198_v63 = vadd.f32 0.5, %v1166_v61  ;;  %v1167_v0 = vmul.f32 0.5, %v1135_v6  ;;  %v1140_v7 = vmul.f32 0.0078125, %v1098_v62 }
 0x234   : > { %v1100_v3 = vpop.xlane.xlu1 %1099 }
 0x235   : > { %1265 = vst [vmem:[%s2394_s2 + $0x98] sm:$0xff] %v1233_v46  ;;  %v1230_v4 = vmul.f32 %v1198_v63, %v2274_v32  ;;  %v1199_v29 = vadd.f32 0.5, %v1167_v0  ;;  %v1172_v5 = vmul.f32 0.5, %v1140_v7  ;;  %v1141_v49 = vmul.f32 0.0078125, %v1100_v3 }
 0x236   : > { %v1094_v8 = vpop.xlane.xlu0 %1093 }
 0x237   : > { %1262 = vst [vmem:[%s2394_s2 + $0x80] sm:$0xff] %v1230_v4  ;;  %v1231_v15 = vmul.f32 %v1199_v29, %v2277_v33  ;;  %v1204_v16 = vadd.f32 0.5, %v1172_v5  ;;  %v1173_v30 = vmul.f32 0.5, %v1141_v49  ;;  %v1138_v52 = vmul.f32 0.0078125, %v1094_v8 }
 0x238   : > { %v1096_v17 = vpop.xlane.xlu1 %1095 }
 0x239   : > { %1263 = vst [vmem:[%s2394_s2 + $0x88] sm:$0xff] %v1231_v15  ;;  %v1236_v25 = vmul.f32 %v1204_v16, %v2306_v13  ;;  %v1205_v20 = vadd.f32 0.5, %v1173_v30  ;;  %v1170_v21 = vmul.f32 0.5, %v1138_v52  ;;  %v1139_v32 = vmul.f32 0.0078125, %v1096_v17 }
 0x23a   : > { %v1106_v1 = vpop.xlane.xlu0 %1105 }
 0x23b   : > { %1268 = vst [vmem:[%s2394_s2 + $0xb0] sm:$0xff] %v1236_v25  ;;  %v1237_v22 = vmul.f32 %v1205_v20, %v2309_v14  ;;  %v1202_v27 = vadd.f32 0.5, %v1170_v21  ;;  %v1171_v28 = vmul.f32 0.5, %v1139_v32  ;;  %v1144_v33 = vmul.f32 0.0078125, %v1106_v1 }
 0x23c   : > { %v1108_v31 = vpop.xlane.xlu1 %1107 }
 0x23d   : > { %1269 = vst [vmem:[%s2394_s2 + $0xb8] sm:$0xff] %v1237_v22  ;;  %v1234_v2 = vmul.f32 %v1202_v27, %v2294_v56  ;;  %v1203_v11 = vadd.f32 0.5, %v1171_v28  ;;  %v1176_v34 = vmul.f32 0.5, %v1144_v33  ;;  %v1145_v13 = vmul.f32 0.0078125, %v1108_v31 }
 0x23e   : > { %v1102_v35 = vpop.xlane.xlu0 %1101 }
 0x23f   : > { %1266 = vst [vmem:[%s2394_s2 + $0xa0] sm:$0xff] %v1234_v2  ;;  %v1235_v37 = vmul.f32 %v1203_v11, %v2297_v57  ;;  %v1208_v50 = vadd.f32 0.5, %v1176_v34  ;;  %v1177_v36 = vmul.f32 0.5, %v1145_v13  ;;  %v1142_v14 = vmul.f32 0.0078125, %v1102_v35 }
 0x240   : > { %v1104_v26 = vpop.xlane.xlu1 %1103 }
 0x241   : > { %1267 = vst [vmem:[%s2394_s2 + $0xa8] sm:$0xff] %v1235_v37  ;;  %v1240_v38 = vmul.f32 %v1208_v50, %v2326_v41  ;;  %v1209_v39 = vadd.f32 0.5, %v1177_v36  ;;  %v1174_v51 = vmul.f32 0.5, %v1142_v14  ;;  %v1143_v56 = vmul.f32 0.0078125, %v1104_v26 }
 0x242   : > { %v1110_v40 = vpop.xlane.xlu0 %1109 }
 0x243   : > { %1272 = vst [vmem:[%s2394_s2 + $0xd0] sm:$0xff] %v1240_v38  ;;  %v1241_v12 = vmul.f32 %v1209_v39, %v2329_v42  ;;  %v1206_v43 = vadd.f32 0.5, %v1174_v51  ;;  %v1175_v44 = vmul.f32 0.5, %v1143_v56  ;;  %v1146_v57 = vmul.f32 0.0078125, %v1110_v40 }
 0x245   : > { %1273 = vst [vmem:[%s2394_s2 + $0xd8] sm:$0xff] %v1241_v12  ;;  %v1238_v23 = vmul.f32 %v1206_v43, %v2314_v18  ;;  %v1207_v47 = vadd.f32 0.5, %v1175_v44  ;;  %v1178_v54 = vmul.f32 0.5, %v1146_v57 }
 0x246   : > { %v1112_v55 = vpop.xlane.xlu1 %1111  ;;  %v1114_v41 = vpop.xlane.xlu0 %1113 }
 0x247   : > { %1270 = vst [vmem:[%s2394_s2 + $0xc0] sm:$0xff] %v1238_v23  ;;  %v1239_v58 = vmul.f32 %v1207_v47, %v2317_v19  ;;  %v1210_v24 = vadd.f32 0.5, %v1178_v54  ;;  %v1147_v45 = vmul.f32 0.0078125, %v1112_v55  ;;  %v1148_v59 = vmul.f32 0.0078125, %v1114_v41 }
 0x249   : > { %1271 = vst [vmem:[%s2394_s2 + $0xc8] sm:$0xff] %v1239_v58  ;;  %v1242_v42 = vmul.f32 %v1210_v24, %v2334_v48  ;;  %v1179_v60 = vmul.f32 0.5, %v1147_v45  ;;  %v1180_v61 = vmul.f32 0.5, %v1148_v59 }
 0x24a   : > { %v1116_v18 = vpop.xlane.xlu1 %1115 }
 0x24b   : > { %1274 = vst [vmem:[%s2394_s2 + $0xe0] sm:$0xff] %v1242_v42  ;;  %v1211_v6 = vadd.f32 0.5, %v1179_v60  ;;  %v1212_v62 = vadd.f32 0.5, %v1180_v61  ;;  %v1149_v46 = vmul.f32 0.0078125, %v1116_v18 }
 0x24d   : > { %v1243_v63 = vmul.f32 %v1211_v6, %v2337_v53  ;;  %v1244_v19 = vmul.f32 %v1212_v62, %v2346_v9  ;;  %v1181_v0 = vmul.f32 0.5, %v1149_v46 }
 0x24f   : > { %1275 = vst [vmem:[%s2394_s2 + $0xe8] sm:$0xff] %v1243_v63  ;;  %1276 = vst [vmem:[%s2394_s2 + $0xf0] sm:$0xff] %v1244_v19  ;;  %v1213_v7 = vadd.f32 0.5, %v1181_v0  ;;  %1285 = sbr.rel (!%p2541_p12) target bundleno = 623 (0x26f), region = 60 }
 0x251   : > { %v1245_v3 = vmul.f32 %v1213_v7, %v2349_v10 }
 0x253   : > { %1277 = vst [vmem:[%s2394_s2 + $0xf8] sm:$0xff] %v1245_v3 }
 0x254   : > { %s2552_s16 = smov (!%p1288_p8, %s1287_s16), 32 }
 0x255   : > { %s2463_s28 = sshll.u32 %s2552_s16, 7 }
 0x256   : > { %s1292_s17 = ssub.s32 4096, %s2463_s28 }
 0x257   : > { %1293 = vsyncadd %s1279_s12, %s1292_s17  ;;  %p1458_p4 = scmp.ne.s32.totalorder %s2463_s28, 0  ;;  %s1466_s30 = sshll.u32 %s2006_s22, 12 }
 0x258   : > { %s2473_s11 = scalar_lea.hbm %s2525_s5, %s1466_s30  ;;  %s1298_s13 = sshll.u32 %s2394_s2, 4  ;;  %s2476_s13 = int_to_ptr.vmem [resolvable:$true] %s1298_s13 }
 0x259   : > { %s1864_s10 = scalar_lea.vmem %s2476_s13, %s2463_s28  ;;  %s1952_s7 = smov [#allocation10]  }
 0x25a   : > { %p1865_p11 = scmp.ne.s32.totalorder %s2476_s13, %s1864_s10  ;;  %s1868_s14 = sshll.u32 %s1952_s7, 4  ;;  %s1869_s14 = int_to_ptr.vmem [resolvable:$false] %s1868_s14 }
 0x25b   : > { %s1870_s22 = scalar_lea.vmem %s1869_s14, 8192  ;;  %p1871_p0 = scmp.lt.s32.totalorder %s2476_s13, %s1869_s14 }
 0x25c   : > { %p1866_p2 = pnand %p1865_p11, %p1458_p4  ;;  %p1872_p6 = scmp.lt.s32.totalorder %s1870_s22, %s1864_s10 }
 0x25e   : > { %p1867_p10 = pneg %p1866_p2  ;;  %p1873_p1 = por %p1872_p6, %p1871_p0 }
 0x260   : > { %p1874_p3 = pnand %p1873_p1, %p1867_p10 }
 0x262   : > { %1877 = shalt.err (!%p1874_p3)
}
 0x263   : > { %s1878_s23 = scalar_lea.hbm %s2473_s11, %s2463_s28  ;;  %s1882_s2 = scalar_lea.hbm %s2525_s5, 9600 }
 0x264   : > { %p1879_p13 = scmp.ne.s32.totalorder %s2473_s11, %s1878_s23  ;;  %p1883_p9 = scmp.lt.s32.totalorder %s2473_s11, %s2525_s5 }
 0x265   : > { %p1884_p12 = scmp.lt.s32.totalorder %s1882_s2, %s1878_s23 }
 0x266   : > { %p1880_p5 = pnand %p1879_p13, %p1458_p4 }
 0x267   : > { %p1885_p8 = por %p1884_p12, %p1883_p9 }
 0x268   : > { %p1881_p7 = pneg %p1880_p5 }
 0x26a   : > { %p1886_p11 = pnand %p1885_p8, %p1881_p7 }
 0x26c   : > { %1889 = shalt.err (!%p1886_p11)
}
 0x26d   : > { %s1953_s17 = smov 128   ;;  %s1954_s30 = smov 8  }
 0x26e   : > { %1304 = dma.vmem_to_hbm [thread:$0]  (%p1458_p4), %s2476_s13, %s2463_s28, %s2473_s11, %s1279_s12, %s1953_s17, %s1953_s17, %s1954_s30  }
 0x26f PF: > { %p1637_p2 = scmp.ge.s32.totalorder %s1940_s21, 2  ;;  %s1313_s25 = sand.u32 1, %s1928_s18  }
 0x270   : > { %p2542_p10 = scmp.ne.s32.totalorder %s2532_s6, 0  ;;  %s1314_s8 = scalar_lea.sflag [#allocation4], %s1313_s25 }
 0x272   : > { %p1630_p0 = pnand %p1637_p2, %p2542_p10 }
 0x274   : > { %p1631_p6 = pneg %p1630_p0 }
 0x276   : > { %1923 = dma.done.wait (%p1631_p6), %s1314_s8, 4096  }
 0x277   : > { %1925 = vsyncadd (%p1631_p6), %s1314_s8, 4294963200  ;;  %p22_p1 = scmp.ge.s32.totalorder %s2010_s24, 5   ;;  %s2543_s18 = smov %s1932_s19 }
 0x278   : > { %s2544_s19 = smov %s1936_s20  ;;  %s2545_s20 = smov %s2022_s27 }
 0x279   : > { %s2546_s21 = smov %s2010_s24  ;;  %24 = sbr.rel (!%p22_p1) target bundleno = 10 (0xa), region = 106 }
 0x27e   :  { %1319 = vsyncpa [#allocation3], 1 }
 0x27f   :  { %1321 = vsyncpa [#allocation3 + $0x1], 1 }
 0x280   :  { %1322 = vsyncpa [#allocation6], 1 }
 0x281   :  { %1324 = vsyncpa [#allocation6 + $0x1], 1 }
 0x282   :  { %1325 = vsyncpa [#allocation9], 1 }
 0x283   :  { %1326 = vsyncpa [#allocation4], 1 }
 0x284   :  { %1328 = vsyncpa [#allocation4 + $0x1], 1 }

</bundles_post_ra>
